<compile_context>
chip_gen: v7x
topology: tpu7x:2x2x1
jax: 0.10.0
libtpu: 0.0.40
codegen_flags: <defaults>
</compile_context>

<pallas_src>
import math
import numpy as np
import jax
import jax.numpy as jnp
from jax.experimental import pallas as pl
from jax.experimental.pallas import tpu as pltpu

HIDDEN = 32
VOCAB_SIZE = 20


# --------------------------------------------------------------------------
# Fused kernel: level-ordered line-graph GRU message passing + final gather
# --------------------------------------------------------------------------
def _jtnn_enc_kernel(alg_ref, srcx_ref, dstx_ref, mask_ref,
                     wzhx_ref, bzh_ref, wzhsr_ref,
                     wr_ref, bur_ref, ur_ref,
                     inc_ref, x_ref, wgx_ref, wgm_ref, bg_ref,
                     m_out_ref, h_out_ref):
    H = HIDDEN
    E = alg_ref.shape[0]
    L = mask_ref.shape[0]

    A = alg_ref[...].astype(jnp.float32)          # (E, E) line-graph adjacency
    src_x = srcx_ref[...]                         # (E, H)
    dst_x = dstx_ref[...]                         # (E, H)
    Wzh_sr = wzhsr_ref[...]                       # (2H, 2H) blockdiag(Wz_s, Wh_r)
    Ur = ur_ref[...]                              # (H, H)

    # Loop-invariant GRU input projections (hoisted out of the level loop).
    #   zh_const[:, :H] = src_x @ Wz_x + bz ;  zh_const[:, H:] = src_x @ Wh_x + bh
    zh_const = (jnp.dot(src_x, wzhx_ref[...], preferred_element_type=jnp.float32)
                + bzh_ref[...])                   # (E, 2H)
    r_const = (jnp.dot(dst_x, wr_ref[...], preferred_element_type=jnp.float32)
               + bur_ref[...])                    # (E, H)

    def level_body(l, mrm):
        # enc_tree_msg / enc_tree_reduce: predecessor sums for BOTH states in
        # one wide matmul:  [s | accum_rm] = A @ [m | rm]
        s_acc = jnp.dot(A, mrm, preferred_element_type=jnp.float32)   # (E, 2H)
        s = s_acc[:, :H]

        # GRUUpdate.update_zm:  z / h_tilde from one fused (E,2H)x(2H,2H) matmul
        zh = zh_const + jnp.dot(s_acc, Wzh_sr,
                                preferred_element_type=jnp.float32)   # (E, 2H)
        z = jax.nn.sigmoid(zh[:, :H])
        h_tilde = jnp.tanh(zh[:, H:])
        m_new = s + z * (h_tilde - s)              # == (1-z)*s + z*h_tilde

        # GRUUpdate.update_r
        r = jax.nn.sigmoid(
            r_const + jnp.dot(m_new, Ur, preferred_element_type=jnp.float32))
        mrm_new = jnp.concatenate([m_new, r * m_new], axis=1)          # (E, 2H)

        # Only edges of the current BFS level are updated (DGL pull(eid, ...)).
        mask = mask_ref[l]                                             # (E, 1)
        return mrm + mask * (mrm_new - mrm)

    mrm = jax.lax.fori_loop(0, L, level_body,
                            jnp.zeros((E, 2 * H), jnp.float32), unroll=True)

    # Node gather (Inc @ m) + EncoderGatherUpdate, fused after the loop.
    m_fin = mrm[:, :H]                                                 # (E, H)
    m_out_ref[...] = m_fin
    Inc = inc_ref[...].astype(jnp.float32)                             # (N, E)
    m_node = jnp.dot(Inc, m_fin, preferred_element_type=jnp.float32)   # (N, H)
    h = (jnp.dot(x_ref[...], wgx_ref[...], preferred_element_type=jnp.float32)
         + jnp.dot(m_node, wgm_ref[...], preferred_element_type=jnp.float32)
         + bg_ref[...])
    h_out_ref[...] = jnp.maximum(h, 0.0)


# --------------------------------------------------------------------------
# Wrapper (graph preprocessing, embedding lookup, pallas_call plumbing)
# --------------------------------------------------------------------------
def jtnn_encoder_run(params, wid, edges, levels, n_nodes, root_ids):
    H = HIDDEN
    E_real = len(edges)
    L = len(levels)
    E = ((E_real + 7) // 8) * 8          # pad edge count to sublane multiple
    N = ((n_nodes + 7) // 8) * 8         # pad node count to sublane multiple

    src = np.zeros((E,), dtype=np.int32)
    dst = np.zeros((E,), dtype=np.int32)
    src[:E_real] = [e[0] for e in edges]
    dst[:E_real] = [e[1] for e in edges]

    # Line-graph adjacency (backtracking=False):
    # A[e_b, e_a] = 1 if dst(e_a) == src(e_b) and src(e_a) != dst(e_b)
    A_lg = np.zeros((E, E), dtype=np.float32)
    for eb in range(E_real):
        for ea in range(E_real):
            if dst[ea] == src[eb] and src[ea] != dst[eb]:
                A_lg[eb, ea] = 1.0

    # Node/edge incidence for final gather: Inc[v, e] = 1 if dst(e) == v
    Inc = np.zeros((N, E), dtype=np.float32)
    for e in range(E_real):
        Inc[dst[e], e] = 1.0

    # Per-level edge mask, (L, E, 1) -- broadcast over H inside the kernel.
    level_mask = np.zeros((L, E, 1), dtype=np.float32)
    for l, eids in enumerate(levels):
        level_mask[l, np.array(eids, dtype=np.int32), 0] = 1.0

    # Embedding lookup + apply_edges (src_x / dst_x)  -- glue in plain JAX
    wid_pad = np.zeros((N,), dtype=np.int32)
    wid_pad[:n_nodes] = np.asarray(wid, dtype=np.int32)
    x = params["emb"][jnp.asarray(wid_pad)]          # (N, H)
    src_x = x[src]                                   # (E, H) (padded rows inert)
    dst_x = x[dst]                                   # (E, H)

    # Fused GRU weights (host-side, once).
    zeros_hh = jnp.zeros((H, H), jnp.float32)
    Wzh_x = jnp.concatenate([params["Wz_x"], params["Wh_x"]], axis=1)   # (H, 2H)
    bzh = jnp.concatenate([params["bz"], params["bh"]], axis=1)         # (1, 2H)
    Wzh_sr = jnp.concatenate([
        jnp.concatenate([params["Wz_s"], zeros_hh], axis=1),
        jnp.concatenate([zeros_hh, params["Wh_r"]], axis=1),
    ], axis=0)                                                          # (2H, 2H)

    # 0/1 matrices are lossless in bf16 -> halve their HBM/VMEM footprint.
    A_lg = jnp.asarray(A_lg, dtype=jnp.bfloat16)
    Inc = jnp.asarray(Inc, dtype=jnp.bfloat16)
    level_mask = jnp.asarray(level_mask)

    grid_spec = pltpu.PrefetchScalarGridSpec(
        num_scalar_prefetch=0,
        grid=(1,),
        in_specs=[
            pl.BlockSpec((E, E), lambda i: (0, 0)),          # A_lg (bf16)
            pl.BlockSpec((E, H), lambda i: (0, 0)),          # src_x
            pl.BlockSpec((E, H), lambda i: (0, 0)),          # dst_x
            pl.BlockSpec((L, E, 1), lambda i: (0, 0, 0)),    # level mask
            pl.BlockSpec((H, 2 * H), lambda i: (0, 0)),      # Wzh_x
            pl.BlockSpec((1, 2 * H), lambda i: (0, 0)),      # bzh
            pl.BlockSpec((2 * H, 2 * H), lambda i: (0, 0)),  # Wzh_sr
            pl.BlockSpec((H, H), lambda i: (0, 0)),          # Wr
            pl.BlockSpec((1, H), lambda i: (0, 0)),          # bur
            pl.BlockSpec((H, H), lambda i: (0, 0)),          # Ur
            pl.BlockSpec((N, E), lambda i: (0, 0)),          # Inc (bf16)
            pl.BlockSpec((N, H), lambda i: (0, 0)),          # x
            pl.BlockSpec((H, H), lambda i: (0, 0)),          # Wg_x
            pl.BlockSpec((H, H), lambda i: (0, 0)),          # Wg_m
            pl.BlockSpec((1, H), lambda i: (0, 0)),          # bg
        ],
        out_specs=[
            pl.BlockSpec((E, H), lambda i: (0, 0)),          # m_edges
            pl.BlockSpec((N, H), lambda i: (0, 0)),          # h_nodes
        ],
    )

    m_edges_pad, h_nodes_pad = pl.pallas_call(
        _jtnn_enc_kernel,
        out_shape=(jax.ShapeDtypeStruct((E, H), jnp.float32),
                   jax.ShapeDtypeStruct((N, H), jnp.float32)),
        grid_spec=grid_spec,
        compiler_params=pltpu.CompilerParams(
            dimension_semantics=("arbitrary",)),
    )(A_lg, src_x, dst_x, level_mask,
      Wzh_x, bzh, Wzh_sr,
      params["Wr"], params["bur"], params["Ur"],
      Inc, x, params["Wg_x"], params["Wg_m"], params["bg"])

    m_edges = m_edges_pad[:E_real]
    h_nodes = h_nodes_pad[:n_nodes]
    root_vecs = h_nodes[np.asarray(root_ids, dtype=np.int32)]
    return h_nodes, m_edges, root_vecs


# --------------------------------------------------------------------------
# Pure-JAX reference (for correctness check)
# --------------------------------------------------------------------------
def reference_run(params, wid, edges, levels, n_nodes, root_ids):
    H = HIDDEN
    E = len(edges)
    src = np.array([e[0] for e in edges])
    dst = np.array([e[1] for e in edges])

    A = np.zeros((E, E), dtype=np.float32)
    for eb in range(E):
        for ea in range(E):
            if dst[ea] == src[eb] and src[ea] != dst[eb]:
                A[eb, ea] = 1.0
    Inc = np.zeros((n_nodes, E), dtype=np.float32)
    for e in range(E):
        Inc[dst[e], e] = 1.0
    A = jnp.asarray(A)
    Inc = jnp.asarray(Inc)

    x = params["emb"][jnp.asarray(np.asarray(wid, dtype=np.int32))]
    src_x = x[src]
    dst_x = x[dst]

    m = jnp.zeros((E, H), jnp.float32)
    rm = jnp.zeros((E, H), jnp.float32)
    for eids in levels:
        s = A @ m
        accum_rm = A @ rm
        z = jax.nn.sigmoid(src_x @ params["Wz_x"] + s @ params["Wz_s"] + params["bz"])
        h_tilde = jnp.tanh(src_x @ params["Wh_x"] + accum_rm @ params["Wh_r"] + params["bh"])
        m_new = (1.0 - z) * s + z * h_tilde
        r = jax.nn.sigmoid(dst_x @ params["Wr"] + m_new @ params["Ur"] + params["bur"])
        rm_new = r * m_new
        mask = np.zeros((E, 1), dtype=np.float32)
        mask[np.array(eids)] = 1.0
        mask = jnp.asarray(mask)
        m = jnp.where(mask > 0.5, m_new, m)
        rm = jnp.where(mask > 0.5, rm_new, rm)

    m_node = Inc @ m
    h = jnp.maximum(x @ params["Wg_x"] + m_node @ params["Wg_m"] + params["bg"], 0.0)
    return h, m, h[np.asarray(root_ids)]


# --------------------------------------------------------------------------
if __name__ == "__main__":
    H = HIDDEN
    key = jax.random.PRNGKey(0)
    ks = jax.random.split(key, 14)
    sc = 1.0 / math.sqrt(H)
    sc2 = 1.0 / math.sqrt(2 * H)

    params = {
        "emb":  jax.random.normal(ks[0], (VOCAB_SIZE, H), jnp.float32) * 0.1,
        # GRUUpdate: W_z (2H->H), W_r (H->H, no bias), U_r (H->H), W_h (2H->H)
        "Wz_x": jax.random.normal(ks[1], (H, H), jnp.float32) * sc2,
        "Wz_s": jax.random.normal(ks[2], (H, H), jnp.float32) * sc2,
        "bz":   jax.random.normal(ks[3], (1, H), jnp.float32) * sc2,
        "Wh_x": jax.random.normal(ks[4], (H, H), jnp.float32) * sc2,
        "Wh_r": jax.random.normal(ks[5], (H, H), jnp.float32) * sc2,
        "bh":   jax.random.normal(ks[6], (1, H), jnp.float32) * sc2,
        "Wr":   jax.random.normal(ks[7], (H, H), jnp.float32) * sc,
        "Ur":   jax.random.normal(ks[8], (H, H), jnp.float32) * sc,
        "bur":  jax.random.normal(ks[9], (1, H), jnp.float32) * sc,
        # EncoderGatherUpdate: W (2H->H)
        "Wg_x": jax.random.normal(ks[10], (H, H), jnp.float32) * sc2,
        "Wg_m": jax.random.normal(ks[11], (H, H), jnp.float32) * sc2,
        "bg":   jax.random.normal(ks[12], (1, H), jnp.float32) * sc2,
    }

    # Synthetic batched junction-tree forest (2 trees, bidirected edges):
    #   tree 0: 0-1, 0-2, 1-3   (root 0)
    #   tree 1: 4-5, 4-6        (root 4)
    edges = [(0, 1), (1, 0), (0, 2), (2, 0), (1, 3), (3, 1),
             (4, 5), (5, 4), (4, 6), (6, 4)]
    n_nodes = 7
    root_ids = [0, 4]
    # level_order(forest, roots): reversed(bfs_back) then bfs_forward, per level
    levels = [[5], [1, 3, 7, 9], [0, 2, 6, 8], [4]]

    wid = jax.random.randint(ks[13], (n_nodes,), 0, VOCAB_SIZE)

    h_nodes, m_edges, root_vecs = jtnn_encoder_run(
        params, wid, edges, levels, n_nodes, root_ids)
    jax.block_until_ready(root_vecs)

    h_ref, m_ref, root_ref = reference_run(
        params, wid, edges, levels, n_nodes, root_ids)

    np.testing.assert_allclose(np.asarray(m_edges), np.asarray(m_ref),
                               rtol=1e-4, atol=1e-4)
    np.testing.assert_allclose(np.asarray(h_nodes), np.asarray(h_ref),
                               rtol=1e-4, atol=1e-4)
    np.testing.assert_allclose(np.asarray(root_vecs), np.asarray(root_ref),
                               rtol=1e-4, atol=1e-4)

    print("KERNEL_OK")
</pallas_src>

<mosaic_0001>
module attributes {stable_mosaic.version = 11 : i64} {
  func.func @_jtnn_enc_kernel(%arg0: i32, %arg1: memref<16x16xbf16, #tpu.memory_space<vmem>>, %arg2: memref<16x32xf32, #tpu.memory_space<vmem>>, %arg3: memref<16x32xf32, #tpu.memory_space<vmem>>, %arg4: memref<4x16x1xf32, #tpu.memory_space<vmem>>, %arg5: memref<32x64xf32, #tpu.memory_space<vmem>>, %arg6: memref<1x64xf32, #tpu.memory_space<vmem>>, %arg7: memref<64x64xf32, #tpu.memory_space<vmem>>, %arg8: memref<32x32xf32, #tpu.memory_space<vmem>>, %arg9: memref<1x32xf32, #tpu.memory_space<vmem>>, %arg10: memref<32x32xf32, #tpu.memory_space<vmem>>, %arg11: memref<8x16xbf16, #tpu.memory_space<vmem>>, %arg12: memref<8x32xf32, #tpu.memory_space<vmem>>, %arg13: memref<32x32xf32, #tpu.memory_space<vmem>>, %arg14: memref<32x32xf32, #tpu.memory_space<vmem>>, %arg15: memref<1x32xf32, #tpu.memory_space<vmem>>, %arg16: memref<16x32xf32, #tpu.memory_space<vmem>>, %arg17: memref<8x32xf32, #tpu.memory_space<vmem>>) attributes {dimension_semantics = [#tpu.dimension_semantics<arbitrary>], iteration_bounds = array<i64: 1>, scalar_prefetch = 0 : i64, scratch_operands = 0 : i64, tpu.core_type = #tpu.core_type<tc>, window_params = [{pipeline_mode = #tpu.pipeline_mode<synchronous>, transform_indices = @transform_0, window_bounds = array<i64: 16, 16>}, {pipeline_mode = #tpu.pipeline_mode<synchronous>, transform_indices = @transform_1, window_bounds = array<i64: 16, 32>}, {pipeline_mode = #tpu.pipeline_mode<synchronous>, transform_indices = @transform_2, window_bounds = array<i64: 16, 32>}, {pipeline_mode = #tpu.pipeline_mode<synchronous>, transform_indices = @transform_3, window_bounds = array<i64: 4, 16, 1>}, {pipeline_mode = #tpu.pipeline_mode<synchronous>, transform_indices = @transform_4, window_bounds = array<i64: 32, 64>}, {pipeline_mode = #tpu.pipeline_mode<synchronous>, transform_indices = @transform_5, window_bounds = array<i64: 1, 64>}, {pipeline_mode = #tpu.pipeline_mode<synchronous>, transform_indices = @transform_6, window_bounds = array<i64: 64, 64>}, {pipeline_mode = #tpu.pipeline_mode<synchronous>, transform_indices = @transform_7, window_bounds = array<i64: 32, 32>}, {pipeline_mode = #tpu.pipeline_mode<synchronous>, transform_indices = @transform_8, window_bounds = array<i64: 1, 32>}, {pipeline_mode = #tpu.pipeline_mode<synchronous>, transform_indices = @transform_9, window_bounds = array<i64: 32, 32>}, {pipeline_mode = #tpu.pipeline_mode<synchronous>, transform_indices = @transform_10, window_bounds = array<i64: 8, 16>}, {pipeline_mode = #tpu.pipeline_mode<synchronous>, transform_indices = @transform_11, window_bounds = array<i64: 8, 32>}, {pipeline_mode = #tpu.pipeline_mode<synchronous>, transform_indices = @transform_12, window_bounds = array<i64: 32, 32>}, {pipeline_mode = #tpu.pipeline_mode<synchronous>, transform_indices = @transform_13, window_bounds = array<i64: 32, 32>}, {pipeline_mode = #tpu.pipeline_mode<synchronous>, transform_indices = @transform_14, window_bounds = array<i64: 1, 32>}, {pipeline_mode = #tpu.pipeline_mode<synchronous>, transform_indices = @transform_15, window_bounds = array<i64: 16, 32>}, {pipeline_mode = #tpu.pipeline_mode<synchronous>, transform_indices = @transform_16, window_bounds = array<i64: 8, 32>}]} {
    %c0 = arith.constant 0 : index
    %c0_0 = arith.constant 0 : index
    %0 = vector.load %arg1[%c0, %c0_0] : memref<16x16xbf16, #tpu.memory_space<vmem>>, vector<16x16xbf16>
    %1 = arith.extf %0 : vector<16x16xbf16> to vector<16x16xf32>
    %c0_1 = arith.constant 0 : index
    %c0_2 = arith.constant 0 : index
    %2 = vector.load %arg2[%c0_1, %c0_2] : memref<16x32xf32, #tpu.memory_space<vmem>>, vector<16x32xf32>
    %c0_3 = arith.constant 0 : index
    %c0_4 = arith.constant 0 : index
    %3 = vector.load %arg3[%c0_3, %c0_4] : memref<16x32xf32, #tpu.memory_space<vmem>>, vector<16x32xf32>
    %c0_5 = arith.constant 0 : index
    %c0_6 = arith.constant 0 : index
    %4 = vector.load %arg7[%c0_5, %c0_6] : memref<64x64xf32, #tpu.memory_space<vmem>>, vector<64x64xf32>
    %c0_7 = arith.constant 0 : index
    %c0_8 = arith.constant 0 : index
    %5 = vector.load %arg10[%c0_7, %c0_8] : memref<32x32xf32, #tpu.memory_space<vmem>>, vector<32x32xf32>
    %c0_9 = arith.constant 0 : index
    %c0_10 = arith.constant 0 : index
    %6 = vector.load %arg5[%c0_9, %c0_10] : memref<32x64xf32, #tpu.memory_space<vmem>>, vector<32x64xf32>
    %cst = arith.constant dense<0.000000e+00> : vector<16x64xf32>
    %7 = tpu.matmul %2, %6, %cst {dimension_numbers = #tpu.dot_dimension_numbers<[1], [0], [0], [1], [0, 0, 1, 1], [], []>} : vector<16x32xf32>, vector<32x64xf32>, vector<16x64xf32> -> vector<16x64xf32>
    %c0_11 = arith.constant 0 : index
    %c0_12 = arith.constant 0 : index
    %8 = vector.load %arg6[%c0_11, %c0_12] : memref<1x64xf32, #tpu.memory_space<vmem>>, vector<1x64xf32>
    %9 = vector.broadcast %8 : vector<1x64xf32> to vector<16x64xf32>
    %10 = arith.addf %7, %9 : vector<16x64xf32>
    %c0_13 = arith.constant 0 : index
    %c0_14 = arith.constant 0 : index
    %11 = vector.load %arg8[%c0_13, %c0_14] : memref<32x32xf32, #tpu.memory_space<vmem>>, vector<32x32xf32>
    %cst_15 = arith.constant dense<0.000000e+00> : vector<16x32xf32>
    %12 = tpu.matmul %3, %11, %cst_15 {dimension_numbers = #tpu.dot_dimension_numbers<[1], [0], [0], [1], [0, 0, 1, 1], [], []>} : vector<16x32xf32>, vector<32x32xf32>, vector<16x32xf32> -> vector<16x32xf32>
    %c0_16 = arith.constant 0 : index
    %c0_17 = arith.constant 0 : index
    %13 = vector.load %arg9[%c0_16, %c0_17] : memref<1x32xf32, #tpu.memory_space<vmem>>, vector<1x32xf32>
    %14 = vector.broadcast %13 : vector<1x32xf32> to vector<16x32xf32>
    %15 = arith.addf %12, %14 : vector<16x32xf32>
    %cst_18 = arith.constant 0.000000e+00 : f32
    %16 = vector.broadcast %cst_18 : f32 to vector<16x64xf32>
    %c0_i32 = arith.constant 0 : i32
    %cst_19 = arith.constant dense<0.000000e+00> : vector<16x64xf32>
    %17 = tpu.matmul %1, %16, %cst_19 {dimension_numbers = #tpu.dot_dimension_numbers<[1], [0], [0], [1], [0, 0, 1, 1], [], []>} : vector<16x16xf32>, vector<16x64xf32>, vector<16x64xf32> -> vector<16x64xf32>
    %18 = vector.extract_strided_slice %17 {offsets = [0, 0], sizes = [16, 32], strides = [1, 1]} : vector<16x64xf32> to vector<16x32xf32>
    %cst_20 = arith.constant dense<0.000000e+00> : vector<16x64xf32>
    %19 = tpu.matmul %17, %4, %cst_20 {dimension_numbers = #tpu.dot_dimension_numbers<[1], [0], [0], [1], [0, 0, 1, 1], [], []>} : vector<16x64xf32>, vector<64x64xf32>, vector<16x64xf32> -> vector<16x64xf32>
    %20 = arith.addf %10, %19 : vector<16x64xf32>
    %21 = vector.extract_strided_slice %20 {offsets = [0, 0], sizes = [16, 32], strides = [1, 1]} : vector<16x64xf32> to vector<16x32xf32>
    %22 = arith.negf %21 : vector<16x32xf32>
    %23 = math.exp %22 : vector<16x32xf32>
    %cst_21 = arith.constant 1.000000e+00 : f32
    %24 = vector.broadcast %cst_21 : f32 to vector<16x32xf32>
    %25 = arith.addf %24, %23 : vector<16x32xf32>
    %26 = arith.divf %24, %25 : vector<16x32xf32>
    %27 = vector.extract_strided_slice %20 {offsets = [0, 32], sizes = [16, 32], strides = [1, 1]} : vector<16x64xf32> to vector<16x32xf32>
    %28 = math.tanh %27 : vector<16x32xf32>
    %29 = arith.subf %28, %18 : vector<16x32xf32>
    %30 = arith.mulf %26, %29 : vector<16x32xf32>
    %31 = arith.addf %18, %30 : vector<16x32xf32>
    %cst_22 = arith.constant dense<0.000000e+00> : vector<16x32xf32>
    %32 = tpu.matmul %31, %5, %cst_22 {dimension_numbers = #tpu.dot_dimension_numbers<[1], [0], [0], [1], [0, 0, 1, 1], [], []>} : vector<16x32xf32>, vector<32x32xf32>, vector<16x32xf32> -> vector<16x32xf32>
    %33 = arith.addf %15, %32 : vector<16x32xf32>
    %34 = arith.negf %33 : vector<16x32xf32>
    %35 = math.exp %34 : vector<16x32xf32>
    %cst_23 = arith.constant 1.000000e+00 : f32
    %36 = vector.broadcast %cst_23 : f32 to vector<16x32xf32>
    %37 = arith.addf %36, %35 : vector<16x32xf32>
    %38 = arith.divf %36, %37 : vector<16x32xf32>
    %39 = arith.mulf %38, %31 : vector<16x32xf32>
    %40 = tpu.concatenate %31, %39 in 1 : vector<16x32xf32>, vector<16x32xf32> -> vector<16x64xf32>
    %41 = arith.index_cast %c0_i32 : i32 to index
    %c0_24 = arith.constant 0 : index
    %c0_25 = arith.constant 0 : index
    %42 = vector.load %arg4[%41, %c0_24, %c0_25] : memref<4x16x1xf32, #tpu.memory_space<vmem>>, vector<1x16x1xf32>
    %43 = vector.shape_cast %42 : vector<1x16x1xf32> to vector<16x1xf32>
    %44 = arith.subf %40, %16 : vector<16x64xf32>
    %45 = vector.broadcast %43 : vector<16x1xf32> to vector<16x64xf32>
    %46 = arith.mulf %45, %44 : vector<16x64xf32>
    %47 = arith.addf %16, %46 : vector<16x64xf32>
    %c1_i32 = arith.constant 1 : i32
    %cst_26 = arith.constant dense<0.000000e+00> : vector<16x64xf32>
    %48 = tpu.matmul %1, %47, %cst_26 {dimension_numbers = #tpu.dot_dimension_numbers<[1], [0], [0], [1], [0, 0, 1, 1], [], []>} : vector<16x16xf32>, vector<16x64xf32>, vector<16x64xf32> -> vector<16x64xf32>
    %49 = vector.extract_strided_slice %48 {offsets = [0, 0], sizes = [16, 32], strides = [1, 1]} : vector<16x64xf32> to vector<16x32xf32>
    %cst_27 = arith.constant dense<0.000000e+00> : vector<16x64xf32>
    %50 = tpu.matmul %48, %4, %cst_27 {dimension_numbers = #tpu.dot_dimension_numbers<[1], [0], [0], [1], [0, 0, 1, 1], [], []>} : vector<16x64xf32>, vector<64x64xf32>, vector<16x64xf32> -> vector<16x64xf32>
    %51 = arith.addf %10, %50 : vector<16x64xf32>
    %52 = vector.extract_strided_slice %51 {offsets = [0, 0], sizes = [16, 32], strides = [1, 1]} : vector<16x64xf32> to vector<16x32xf32>
    %53 = arith.negf %52 : vector<16x32xf32>
    %54 = math.exp %53 : vector<16x32xf32>
    %cst_28 = arith.constant 1.000000e+00 : f32
    %55 = vector.broadcast %cst_28 : f32 to vector<16x32xf32>
    %56 = arith.addf %55, %54 : vector<16x32xf32>
    %57 = arith.divf %55, %56 : vector<16x32xf32>
    %58 = vector.extract_strided_slice %51 {offsets = [0, 32], sizes = [16, 32], strides = [1, 1]} : vector<16x64xf32> to vector<16x32xf32>
    %59 = math.tanh %58 : vector<16x32xf32>
    %60 = arith.subf %59, %49 : vector<16x32xf32>
    %61 = arith.mulf %57, %60 : vector<16x32xf32>
    %62 = arith.addf %49, %61 : vector<16x32xf32>
    %cst_29 = arith.constant dense<0.000000e+00> : vector<16x32xf32>
    %63 = tpu.matmul %62, %5, %cst_29 {dimension_numbers = #tpu.dot_dimension_numbers<[1], [0], [0], [1], [0, 0, 1, 1], [], []>} : vector<16x32xf32>, vector<32x32xf32>, vector<16x32xf32> -> vector<16x32xf32>
    %64 = arith.addf %15, %63 : vector<16x32xf32>
    %65 = arith.negf %64 : vector<16x32xf32>
    %66 = math.exp %65 : vector<16x32xf32>
    %cst_30 = arith.constant 1.000000e+00 : f32
    %67 = vector.broadcast %cst_30 : f32 to vector<16x32xf32>
    %68 = arith.addf %67, %66 : vector<16x32xf32>
    %69 = arith.divf %67, %68 : vector<16x32xf32>
    %70 = arith.mulf %69, %62 : vector<16x32xf32>
    %71 = tpu.concatenate %62, %70 in 1 : vector<16x32xf32>, vector<16x32xf32> -> vector<16x64xf32>
    %72 = arith.index_cast %c1_i32 : i32 to index
    %c0_31 = arith.constant 0 : index
    %c0_32 = arith.constant 0 : index
    %73 = vector.load %arg4[%72, %c0_31, %c0_32] : memref<4x16x1xf32, #tpu.memory_space<vmem>>, vector<1x16x1xf32>
    %74 = vector.shape_cast %73 : vector<1x16x1xf32> to vector<16x1xf32>
    %75 = arith.subf %71, %47 : vector<16x64xf32>
    %76 = vector.broadcast %74 : vector<16x1xf32> to vector<16x64xf32>
    %77 = arith.mulf %76, %75 : vector<16x64xf32>
    %78 = arith.addf %47, %77 : vector<16x64xf32>
    %c2_i32 = arith.constant 2 : i32
    %cst_33 = arith.constant dense<0.000000e+00> : vector<16x64xf32>
    %79 = tpu.matmul %1, %78, %cst_33 {dimension_numbers = #tpu.dot_dimension_numbers<[1], [0], [0], [1], [0, 0, 1, 1], [], []>} : vector<16x16xf32>, vector<16x64xf32>, vector<16x64xf32> -> vector<16x64xf32>
    %80 = vector.extract_strided_slice %79 {offsets = [0, 0], sizes = [16, 32], strides = [1, 1]} : vector<16x64xf32> to vector<16x32xf32>
    %cst_34 = arith.constant dense<0.000000e+00> : vector<16x64xf32>
    %81 = tpu.matmul %79, %4, %cst_34 {dimension_numbers = #tpu.dot_dimension_numbers<[1], [0], [0], [1], [0, 0, 1, 1], [], []>} : vector<16x64xf32>, vector<64x64xf32>, vector<16x64xf32> -> vector<16x64xf32>
    %82 = arith.addf %10, %81 : vector<16x64xf32>
    %83 = vector.extract_strided_slice %82 {offsets = [0, 0], sizes = [16, 32], strides = [1, 1]} : vector<16x64xf32> to vector<16x32xf32>
    %84 = arith.negf %83 : vector<16x32xf32>
    %85 = math.exp %84 : vector<16x32xf32>
    %cst_35 = arith.constant 1.000000e+00 : f32
    %86 = vector.broadcast %cst_35 : f32 to vector<16x32xf32>
    %87 = arith.addf %86, %85 : vector<16x32xf32>
    %88 = arith.divf %86, %87 : vector<16x32xf32>
    %89 = vector.extract_strided_slice %82 {offsets = [0, 32], sizes = [16, 32], strides = [1, 1]} : vector<16x64xf32> to vector<16x32xf32>
    %90 = math.tanh %89 : vector<16x32xf32>
    %91 = arith.subf %90, %80 : vector<16x32xf32>
    %92 = arith.mulf %88, %91 : vector<16x32xf32>
    %93 = arith.addf %80, %92 : vector<16x32xf32>
    %cst_36 = arith.constant dense<0.000000e+00> : vector<16x32xf32>
    %94 = tpu.matmul %93, %5, %cst_36 {dimension_numbers = #tpu.dot_dimension_numbers<[1], [0], [0], [1], [0, 0, 1, 1], [], []>} : vector<16x32xf32>, vector<32x32xf32>, vector<16x32xf32> -> vector<16x32xf32>
    %95 = arith.addf %15, %94 : vector<16x32xf32>
    %96 = arith.negf %95 : vector<16x32xf32>
    %97 = math.exp %96 : vector<16x32xf32>
    %cst_37 = arith.constant 1.000000e+00 : f32
    %98 = vector.broadcast %cst_37 : f32 to vector<16x32xf32>
    %99 = arith.addf %98, %97 : vector<16x32xf32>
    %100 = arith.divf %98, %99 : vector<16x32xf32>
    %101 = arith.mulf %100, %93 : vector<16x32xf32>
    %102 = tpu.concatenate %93, %101 in 1 : vector<16x32xf32>, vector<16x32xf32> -> vector<16x64xf32>
    %103 = arith.index_cast %c2_i32 : i32 to index
    %c0_38 = arith.constant 0 : index
    %c0_39 = arith.constant 0 : index
    %104 = vector.load %arg4[%103, %c0_38, %c0_39] : memref<4x16x1xf32, #tpu.memory_space<vmem>>, vector<1x16x1xf32>
    %105 = vector.shape_cast %104 : vector<1x16x1xf32> to vector<16x1xf32>
    %106 = arith.subf %102, %78 : vector<16x64xf32>
    %107 = vector.broadcast %105 : vector<16x1xf32> to vector<16x64xf32>
    %108 = arith.mulf %107, %106 : vector<16x64xf32>
    %109 = arith.addf %78, %108 : vector<16x64xf32>
    %c3_i32 = arith.constant 3 : i32
    %cst_40 = arith.constant dense<0.000000e+00> : vector<16x64xf32>
    %110 = tpu.matmul %1, %109, %cst_40 {dimension_numbers = #tpu.dot_dimension_numbers<[1], [0], [0], [1], [0, 0, 1, 1], [], []>} : vector<16x16xf32>, vector<16x64xf32>, vector<16x64xf32> -> vector<16x64xf32>
    %111 = vector.extract_strided_slice %110 {offsets = [0, 0], sizes = [16, 32], strides = [1, 1]} : vector<16x64xf32> to vector<16x32xf32>
    %cst_41 = arith.constant dense<0.000000e+00> : vector<16x64xf32>
    %112 = tpu.matmul %110, %4, %cst_41 {dimension_numbers = #tpu.dot_dimension_numbers<[1], [0], [0], [1], [0, 0, 1, 1], [], []>} : vector<16x64xf32>, vector<64x64xf32>, vector<16x64xf32> -> vector<16x64xf32>
    %113 = arith.addf %10, %112 : vector<16x64xf32>
    %114 = vector.extract_strided_slice %113 {offsets = [0, 0], sizes = [16, 32], strides = [1, 1]} : vector<16x64xf32> to vector<16x32xf32>
    %115 = arith.negf %114 : vector<16x32xf32>
    %116 = math.exp %115 : vector<16x32xf32>
    %cst_42 = arith.constant 1.000000e+00 : f32
    %117 = vector.broadcast %cst_42 : f32 to vector<16x32xf32>
    %118 = arith.addf %117, %116 : vector<16x32xf32>
    %119 = arith.divf %117, %118 : vector<16x32xf32>
    %120 = vector.extract_strided_slice %113 {offsets = [0, 32], sizes = [16, 32], strides = [1, 1]} : vector<16x64xf32> to vector<16x32xf32>
    %121 = math.tanh %120 : vector<16x32xf32>
    %122 = arith.subf %121, %111 : vector<16x32xf32>
    %123 = arith.mulf %119, %122 : vector<16x32xf32>
    %124 = arith.addf %111, %123 : vector<16x32xf32>
    %cst_43 = arith.constant dense<0.000000e+00> : vector<16x32xf32>
    %125 = tpu.matmul %124, %5, %cst_43 {dimension_numbers = #tpu.dot_dimension_numbers<[1], [0], [0], [1], [0, 0, 1, 1], [], []>} : vector<16x32xf32>, vector<32x32xf32>, vector<16x32xf32> -> vector<16x32xf32>
    %126 = arith.addf %15, %125 : vector<16x32xf32>
    %127 = arith.negf %126 : vector<16x32xf32>
    %128 = math.exp %127 : vector<16x32xf32>
    %cst_44 = arith.constant 1.000000e+00 : f32
    %129 = vector.broadcast %cst_44 : f32 to vector<16x32xf32>
    %130 = arith.addf %129, %128 : vector<16x32xf32>
    %131 = arith.divf %129, %130 : vector<16x32xf32>
    %132 = arith.mulf %131, %124 : vector<16x32xf32>
    %133 = tpu.concatenate %124, %132 in 1 : vector<16x32xf32>, vector<16x32xf32> -> vector<16x64xf32>
    %134 = arith.index_cast %c3_i32 : i32 to index
    %c0_45 = arith.constant 0 : index
    %c0_46 = arith.constant 0 : index
    %135 = vector.load %arg4[%134, %c0_45, %c0_46] : memref<4x16x1xf32, #tpu.memory_space<vmem>>, vector<1x16x1xf32>
    %136 = vector.shape_cast %135 : vector<1x16x1xf32> to vector<16x1xf32>
    %137 = arith.subf %133, %109 : vector<16x64xf32>
    %138 = vector.broadcast %136 : vector<16x1xf32> to vector<16x64xf32>
    %139 = arith.mulf %138, %137 : vector<16x64xf32>
    %140 = arith.addf %109, %139 : vector<16x64xf32>
    %c4_i32 = arith.constant 4 : i32
    %141 = vector.extract_strided_slice %140 {offsets = [0, 0], sizes = [16, 32], strides = [1, 1]} : vector<16x64xf32> to vector<16x32xf32>
    %c0_47 = arith.constant 0 : index
    %c0_48 = arith.constant 0 : index
    %142 = vector.load %arg16[%c0_47, %c0_48] : memref<16x32xf32, #tpu.memory_space<vmem>>, vector<16x32xf32>
    tpu.vector_store %arg16[%c0_47, %c0_48], %141 {strides = array<i32>} : memref<16x32xf32, #tpu.memory_space<vmem>>, vector<16x32xf32>,
    %c0_49 = arith.constant 0 : index
    %c0_50 = arith.constant 0 : index
    %143 = vector.load %arg11[%c0_49, %c0_50] : memref<8x16xbf16, #tpu.memory_space<vmem>>, vector<8x16xbf16>
    %144 = arith.extf %143 : vector<8x16xbf16> to vector<8x16xf32>
    %cst_51 = arith.constant dense<0.000000e+00> : vector<8x32xf32>
    %145 = tpu.matmul %144, %141, %cst_51 {dimension_numbers = #tpu.dot_dimension_numbers<[1], [0], [0], [1], [0, 0, 1, 1], [], []>} : vector<8x16xf32>, vector<16x32xf32>, vector<8x32xf32> -> vector<8x32xf32>
    %c0_52 = arith.constant 0 : index
    %c0_53 = arith.constant 0 : index
    %146 = vector.load %arg12[%c0_52, %c0_53] : memref<8x32xf32, #tpu.memory_space<vmem>>, vector<8x32xf32>
    %c0_54 = arith.constant 0 : index
    %c0_55 = arith.constant 0 : index
    %147 = vector.load %arg13[%c0_54, %c0_55] : memref<32x32xf32, #tpu.memory_space<vmem>>, vector<32x32xf32>
    %cst_56 = arith.constant dense<0.000000e+00> : vector<8x32xf32>
    %148 = tpu.matmul %146, %147, %cst_56 {dimension_numbers = #tpu.dot_dimension_numbers<[1], [0], [0], [1], [0, 0, 1, 1], [], []>} : vector<8x32xf32>, vector<32x32xf32>, vector<8x32xf32> -> vector<8x32xf32>
    %c0_57 = arith.constant 0 : index
    %c0_58 = arith.constant 0 : index
    %149 = vector.load %arg14[%c0_57, %c0_58] : memref<32x32xf32, #tpu.memory_space<vmem>>, vector<32x32xf32>
    %cst_59 = arith.constant dense<0.000000e+00> : vector<8x32xf32>
    %150 = tpu.matmul %145, %149, %cst_59 {dimension_numbers = #tpu.dot_dimension_numbers<[1], [0], [0], [1], [0, 0, 1, 1], [], []>} : vector<8x32xf32>, vector<32x32xf32>, vector<8x32xf32> -> vector<8x32xf32>
    %151 = arith.addf %148, %150 : vector<8x32xf32>
    %c0_60 = arith.constant 0 : index
    %c0_61 = arith.constant 0 : index
    %152 = vector.load %arg15[%c0_60, %c0_61] : memref<1x32xf32, #tpu.memory_space<vmem>>, vector<1x32xf32>
    %153 = vector.broadcast %152 : vector<1x32xf32> to vector<8x32xf32>
    %154 = arith.addf %151, %153 : vector<8x32xf32>
    %cst_62 = arith.constant 0.000000e+00 : f32
    %155 = vector.broadcast %cst_62 : f32 to vector<8x32xf32>
    %156 = arith.maximumf %154, %155 : vector<8x32xf32>
    %c0_63 = arith.constant 0 : index
    %c0_64 = arith.constant 0 : index
    %157 = vector.load %arg17[%c0_63, %c0_64] : memref<8x32xf32, #tpu.memory_space<vmem>>, vector<8x32xf32>
    tpu.vector_store %arg17[%c0_63, %c0_64], %156 {strides = array<i32>} : memref<8x32xf32, #tpu.memory_space<vmem>>, vector<8x32xf32>,
    return
  }
  func.func @transform_0(%arg0: i32) -> (i32, i32) {
    %c0_i32 = arith.constant 0 : i32
    %c0_i32_0 = arith.constant 0 : i32
    %c0_i32_1 = arith.constant 0 : i32
    return %c0_i32, %c0_i32_0 : i32, i32
  }
  func.func @transform_1(%arg0: i32) -> (i32, i32) {
    %c0_i32 = arith.constant 0 : i32
    %c0_i32_0 = arith.constant 0 : i32
    %c0_i32_1 = arith.constant 0 : i32
    return %c0_i32, %c0_i32_0 : i32, i32
  }
  func.func @transform_2(%arg0: i32) -> (i32, i32) {
    %c0_i32 = arith.constant 0 : i32
    %c0_i32_0 = arith.constant 0 : i32
    %c0_i32_1 = arith.constant 0 : i32
    return %c0_i32, %c0_i32_0 : i32, i32
  }
  func.func @transform_3(%arg0: i32) -> (i32, i32, i32) {
    %c0_i32 = arith.constant 0 : i32
    %c0_i32_0 = arith.constant 0 : i32
    %c0_i32_1 = arith.constant 0 : i32
    %c0_i32_2 = arith.constant 0 : i32
    return %c0_i32, %c0_i32_0, %c0_i32_1 : i32, i32, i32
  }
  func.func @transform_4(%arg0: i32) -> (i32, i32) {
    %c0_i32 = arith.constant 0 : i32
    %c0_i32_0 = arith.constant 0 : i32
    %c0_i32_1 = arith.constant 0 : i32
    return %c0_i32, %c0_i32_0 : i32, i32
  }
  func.func @transform_5(%arg0: i32) -> (i32, i32) {
    %c0_i32 = arith.constant 0 : i32
    %c0_i32_0 = arith.constant 0 : i32
    %c0_i32_1 = arith.constant 0 : i32
    return %c0_i32, %c0_i32_0 : i32, i32
  }
  func.func @transform_6(%arg0: i32) -> (i32, i32) {
    %c0_i32 = arith.constant 0 : i32
    %c0_i32_0 = arith.constant 0 : i32
    %c0_i32_1 = arith.constant 0 : i32
    return %c0_i32, %c0_i32_0 : i32, i32
  }
  func.func @transform_7(%arg0: i32) -> (i32, i32) {
    %c0_i32 = arith.constant 0 : i32
    %c0_i32_0 = arith.constant 0 : i32
    %c0_i32_1 = arith.constant 0 : i32
    return %c0_i32, %c0_i32_0 : i32, i32
  }
  func.func @transform_8(%arg0: i32) -> (i32, i32) {
    %c0_i32 = arith.constant 0 : i32
    %c0_i32_0 = arith.constant 0 : i32
    %c0_i32_1 = arith.constant 0 : i32
    return %c0_i32, %c0_i32_0 : i32, i32
  }
  func.func @transform_9(%arg0: i32) -> (i32, i32) {
    %c0_i32 = arith.constant 0 : i32
    %c0_i32_0 = arith.constant 0 : i32
    %c0_i32_1 = arith.constant 0 : i32
    return %c0_i32, %c0_i32_0 : i32, i32
  }
  func.func @transform_10(%arg0: i32) -> (i32, i32) {
    %c0_i32 = arith.constant 0 : i32
    %c0_i32_0 = arith.constant 0 : i32
    %c0_i32_1 = arith.constant 0 : i32
    return %c0_i32, %c0_i32_0 : i32, i32
  }
  func.func @transform_11(%arg0: i32) -> (i32, i32) {
    %c0_i32 = arith.constant 0 : i32
    %c0_i32_0 = arith.constant 0 : i32
    %c0_i32_1 = arith.constant 0 : i32
    return %c0_i32, %c0_i32_0 : i32, i32
  }
  func.func @transform_12(%arg0: i32) -> (i32, i32) {
    %c0_i32 = arith.constant 0 : i32
    %c0_i32_0 = arith.constant 0 : i32
    %c0_i32_1 = arith.constant 0 : i32
    return %c0_i32, %c0_i32_0 : i32, i32
  }
  func.func @transform_13(%arg0: i32) -> (i32, i32) {
    %c0_i32 = arith.constant 0 : i32
    %c0_i32_0 = arith.constant 0 : i32
    %c0_i32_1 = arith.constant 0 : i32
    return %c0_i32, %c0_i32_0 : i32, i32
  }
  func.func @transform_14(%arg0: i32) -> (i32, i32) {
    %c0_i32 = arith.constant 0 : i32
    %c0_i32_0 = arith.constant 0 : i32
    %c0_i32_1 = arith.constant 0 : i32
    return %c0_i32, %c0_i32_0 : i32, i32
  }
  func.func @transform_15(%arg0: i32) -> (i32, i32) {
    %c0_i32 = arith.constant 0 : i32
    %c0_i32_0 = arith.constant 0 : i32
    %c0_i32_1 = arith.constant 0 : i32
    return %c0_i32, %c0_i32_0 : i32, i32
  }
  func.func @transform_16(%arg0: i32) -> (i32, i32) {
    %c0_i32 = arith.constant 0 : i32
    %c0_i32_0 = arith.constant 0 : i32
    %c0_i32_1 = arith.constant 0 : i32
    return %c0_i32, %c0_i32_0 : i32, i32
  }
}

</mosaic_0001>

<bundles_post_ra>
// kernel: tpu_custom_call.1
= control target key start
LH: loop header
LB: loop body
LE: loop exit
PB: predicated region body
PF: predicated region fallthrough
CT: control target
= control target key end

     0   :  { %s3324_s0 = inlined_call_operand.hbm [shape: bf16[16,16], index: 0, kind: input, shape index: {}]   ;;  %s3325_s1 = inlined_call_operand.hbm [shape: f32[16,32], index: 1, kind: input, shape index: {}]   ;;  %s3326_s2 = inlined_call_operand.hbm [shape: f32[16,32], index: 2, kind: input, shape index: {}]   ;;  %s3327_s3 = inlined_call_operand.vmem [shape: f32[4,16,1], index: 3, kind: input, shape index: {}]   ;;  %s3328_s4 = inlined_call_operand.hbm [shape: f32[32,64], index: 4, kind: input, shape index: {}]   ;;  %s3329_s5 = inlined_call_operand.vmem [shape: f32[1,64], index: 5, kind: input, shape index: {}]   ;;  %s3330_s6 = inlined_call_operand.vmem [shape: f32[64,64], index: 6, kind: input, shape index: {}]   ;;  %s3331_s7 = inlined_call_operand.hbm [shape: f32[32,32], index: 7, kind: input, shape index: {}]   ;;  %s3332_s8 = inlined_call_operand.hbm [shape: f32[1,32], index: 8, kind: input, shape index: {}]   ;;  %s3333_s9 = inlined_call_operand.vmem [shape: f32[32,32], index: 9, kind: input, shape index: {}]   ;;  %s3334_s10 = inlined_call_operand.hbm [shape: bf16[8,16], index: 10, kind: input, shape index: {}]   ;;  %s3335_s11 = inlined_call_operand.vmem [shape: f32[8,32], index: 11, kind: input, shape index: {}]   ;;  %s3336_s12 = inlined_call_operand.hbm [shape: f32[32,32], index: 12, kind: input, shape index: {}]   ;;  %s3337_s13 = inlined_call_operand.hbm [shape: f32[32,32], index: 13, kind: input, shape index: {}]   ;;  %s3338_s14 = inlined_call_operand.vmem [shape: f32[1,32], index: 14, kind: input, shape index: {}]   ;;  %s3339_s15 = inlined_call_operand.hbm [shape: f32[16,32], index: 15, kind: output, shape index: {0}]   ;;  %s3340_s16 = inlined_call_operand.hbm [shape: f32[8,32], index: 16, kind: output, shape index: {1}]  }
   0x1   :  { %3343 = sst [smem:[#allocation27_spill]] %s3324_s0 }
   0x2   :  { %3344 = sst [smem:[#allocation28_spill]] %s3340_s16 }
   0x3   :  { %22 = vsyncpa [#allocation3], 0 }
   0x4   :  { %23 = vsyncpa [#allocation6], 0 }
   0x5   :  { %24 = vsyncpa [#allocation9], 0 }
   0x6   :  { %25 = vsyncpa [#allocation12], 0 }
   0x7   :  { %26 = vsyncpa [#allocation15], 0 }
   0x8   :  { %27 = vsyncpa [#allocation4], 0 }
   0x9   :  { %28 = vsyncpa [#allocation19], 0  ;;  %s2790_s21 = smov [#allocation5]   ;;  %s2534_s25 = scalar_lea.hbm %s3325_s1, 256 }
   0xa   :  { %s46_s22 = sshll.u32 %s2790_s21, 4  ;;  %p2535_p0 = scmp.ne.s32.totalorder %s3325_s1, %s2534_s25  ;;  %s47_s22 = int_to_ptr.vmem [resolvable:$true] %s46_s22 }
   0xb   :  { %p2538_p1 = scmp.lt.u32.totalorder %s2534_s25, %s3325_s1 }
   0xd   :  { %p2540_p2 = pnand %p2538_p1, %p2535_p0 }
   0xf   :  { %2543 = shalt.err (!%p2540_p2)
}
  0x10   :  { %s2544_s30 = scalar_lea.vmem %s47_s22, 256  ;;  %p2549_p4 = scmp.lt.s32.totalorder %s47_s22, %s47_s22 }
  0x11   :  { %p2545_p3 = scmp.ne.s32.totalorder %s47_s22, %s2544_s30  ;;  %p2550_p5 = scmp.lt.s32.totalorder %s2544_s30, %s2544_s30 }
  0x13   :  { %p2551_p6 = por %p2550_p5, %p2549_p4 }
  0x15   :  { %p2552_p7 = pnand %p2551_p6, %p2545_p3 }
  0x17   :  { %2555 = shalt.err (!%p2552_p7)
}
  0x18   :  { %s2791_s0 = smov 128   ;;  %s2792_s17 = smov 8  }
  0x19   :  { %52 = dma.hbm_to_vmem [thread:$0]  %s3325_s1, 256, %s47_s22, [#allocation6], %s2791_s0, %s2791_s0, %s2792_s17  }
  0x1a   :  { %s2793_s20 = smov [#allocation8]   ;;  %s2794_s23 = smov [#allocation11]  }
  0x1b   :  { %s72_s21 = sshll.u32 %s2793_s20, 4  ;;  %s101_s24 = sshll.u32 %s2794_s23, 4  ;;  %s73_s21 = int_to_ptr.vmem [resolvable:$true] %s72_s21  ;;  %s102_s24 = int_to_ptr.vmem [resolvable:$true] %s101_s24 }
  0x1c   :  { %s2556_s27 = scalar_lea.hbm %s3328_s4, 512 }
  0x1d   :  { %p2557_p8 = scmp.ne.s32.totalorder %s3328_s4, %s2556_s27  ;;  %p2560_p9 = scmp.lt.u32.totalorder %s2556_s27, %s3328_s4 }
  0x1f   :  { %p2562_p10 = pnand %p2560_p9, %p2557_p8 }
  0x21   :  { %2565 = shalt.err (!%p2562_p10)
}
  0x22   :  { %s2566_s1 = scalar_lea.vmem %s73_s21, 512  ;;  %p2571_p12 = scmp.lt.s32.totalorder %s73_s21, %s73_s21 }
  0x23   :  { %p2567_p11 = scmp.ne.s32.totalorder %s73_s21, %s2566_s1  ;;  %p2572_p13 = scmp.lt.s32.totalorder %s2566_s1, %s2566_s1 }
  0x25   :  { %p2573_p0 = por %p2572_p13, %p2571_p12 }
  0x27   :  { %p2574_p1 = pnand %p2573_p0, %p2567_p11 }
  0x29   :  { %2577 = shalt.err (!%p2574_p1)
}
  0x2a   :  { %78 = dma.hbm_to_vmem [thread:$0]  %s3328_s4, 512, %s73_s21, [#allocation9], %s2791_s0, %s2791_s0, %s2792_s17  }
  0x2b   :  { %s2578_s20 = scalar_lea.hbm %s3332_s8, 16 }
  0x2c   :  { %p2579_p2 = scmp.ne.s32.totalorder %s3332_s8, %s2578_s20  ;;  %p2582_p3 = scmp.lt.u32.totalorder %s2578_s20, %s3332_s8 }
  0x2e   :  { %p2584_p4 = pnand %p2582_p3, %p2579_p2 }
  0x30   :  { %2587 = shalt.err (!%p2584_p4)
}
  0x31   :  { %s2588_s28 = scalar_lea.vmem %s102_s24, 16  ;;  %s2592_s29 = scalar_lea.vmem %s102_s24, 32 }
  0x32   :  { %p2589_p5 = scmp.ne.s32.totalorder %s102_s24, %s2588_s28  ;;  %p2593_p6 = scmp.lt.s32.totalorder %s102_s24, %s102_s24 }
  0x33   :  { %p2594_p7 = scmp.lt.s32.totalorder %s2592_s29, %s2588_s28 }
  0x35   :  { %p2595_p8 = por %p2594_p7, %p2593_p6 }
  0x37   :  { %p2596_p9 = pnand %p2595_p8, %p2589_p5 }
  0x39   :  { %2599 = shalt.err (!%p2596_p9)
}
  0x3a   :  { %104 = dma.hbm_to_vmem [thread:$0]  %s3332_s8, 16, %s102_s24, [#allocation12]  }
  0x3b   :  { %s2795_s30 = smov [#allocation14]   ;;  %s2796_s22 = smov [#allocation2]  }
  0x3c   :  { %s124_s1 = sshll.u32 %s2795_s30, 4  ;;  %s34_s18 = sshll.u32 %s2796_s22, 4  ;;  %s125_s1 = int_to_ptr.vmem [resolvable:$true] %s124_s1  ;;  %s35_s18 = int_to_ptr.vmem [resolvable:$true] %s34_s18 }
  0x3d   :  { %s2600_s20 = scalar_lea.hbm %s3336_s12, 512 }
  0x3e   :  { %p2601_p10 = scmp.ne.s32.totalorder %s3336_s12, %s2600_s20  ;;  %p2604_p11 = scmp.lt.u32.totalorder %s2600_s20, %s3336_s12 }
  0x40   :  { %p2606_p12 = pnand %p2604_p11, %p2601_p10 }
  0x42   :  { %2609 = shalt.err (!%p2606_p12)
}
  0x43   :  { %s2610_s8 = scalar_lea.vmem %s125_s1, 512  ;;  %p2615_p0 = scmp.lt.s32.totalorder %s125_s1, %s125_s1 }
  0x44   :  { %p2611_p13 = scmp.ne.s32.totalorder %s125_s1, %s2610_s8  ;;  %p2616_p1 = scmp.lt.s32.totalorder %s2610_s8, %s2610_s8 }
  0x46   :  { %p2617_p2 = por %p2616_p1, %p2615_p0 }
  0x48   :  { %p2618_p3 = pnand %p2617_p2, %p2611_p13 }
  0x4a   :  { %2621 = shalt.err (!%p2618_p3)
}
  0x4b   :  { %130 = dma.hbm_to_vmem [thread:$0]  %s3336_s12, 512, %s125_s1, [#allocation15], %s2791_s0, %s2791_s0, %s2792_s17  }
  0x4c   :  { %s3345_s21 = sld [smem:[#allocation27_spill]] }
  0x52   :  { %s2622_s30 = scalar_lea.hbm %s3345_s21, 128 }
  0x53   :  { %p2623_p4 = scmp.ne.s32.totalorder %s3345_s21, %s2622_s30  ;;  %p2626_p5 = scmp.lt.u32.totalorder %s2622_s30, %s3345_s21 }
  0x55   :  { %p2628_p6 = pnand %p2626_p5, %p2623_p4 }
  0x57   :  { %2631 = shalt.err (!%p2628_p6)
}
  0x58   :  { %s2632_s23 = scalar_lea.vmem %s35_s18, 128  ;;  %p2637_p8 = scmp.lt.s32.totalorder %s35_s18, %s35_s18 }
  0x59   :  { %p2633_p7 = scmp.ne.s32.totalorder %s35_s18, %s2632_s23  ;;  %p2638_p9 = scmp.lt.s32.totalorder %s2632_s23, %s2632_s23 }
  0x5b   :  { %p2639_p10 = por %p2638_p9, %p2637_p8 }
  0x5d   :  { %p2640_p11 = pnand %p2639_p10, %p2633_p7 }
  0x5f   :  { %2643 = shalt.err (!%p2640_p11)
}
  0x60   :  { %s2797_s12 = smov 64   ;;  %s2798_s1 = smov 4  }
  0x61   :  { %40 = dma.hbm_to_vmem [thread:$0]  %s3345_s21, 128, %s35_s18, [#allocation3], %s2797_s12, %s2797_s12, %s2798_s1  }
  0x62   :  { %s2799_s27 = smov [#allocation7]   ;;  %s2800_s24 = smov [#allocation10]  }
  0x63   :  { %s58_s8 = sshll.u32 %s2799_s27, 4  ;;  %s88_s28 = sshll.u32 %s2800_s24, 4  ;;  %s59_s8 = int_to_ptr.vmem [resolvable:$true] %s58_s8  ;;  %s89_s28 = int_to_ptr.vmem [resolvable:$true] %s88_s28 }
  0x64   :  { %s2644_s30 = scalar_lea.hbm %s3326_s2, 256 }
  0x65   :  { %p2645_p12 = scmp.ne.s32.totalorder %s3326_s2, %s2644_s30  ;;  %p2648_p13 = scmp.lt.u32.totalorder %s2644_s30, %s3326_s2 }
  0x67   :  { %p2650_p0 = pnand %p2648_p13, %p2645_p12 }
  0x69   :  { %2653 = shalt.err (!%p2650_p0)
}
  0x6a   :  { %s2654_s18 = scalar_lea.vmem %s59_s8, 256  ;;  %p2659_p2 = scmp.lt.s32.totalorder %s59_s8, %s59_s8 }
  0x6b   :  { %p2655_p1 = scmp.ne.s32.totalorder %s59_s8, %s2654_s18  ;;  %p2660_p3 = scmp.lt.s32.totalorder %s2654_s18, %s2654_s18 }
  0x6d   :  { %p2661_p4 = por %p2660_p3, %p2659_p2 }
  0x6f   :  { %p2662_p5 = pnand %p2661_p4, %p2655_p1 }
  0x71   :  { %2665 = shalt.err (!%p2662_p5)
}
  0x72   :  { %64 = dma.hbm_to_vmem [thread:$0]  %s3326_s2, 256, %s59_s8, [#allocation6], %s2791_s0, %s2791_s0, %s2792_s17  }
  0x73   :  { %s2666_s25 = scalar_lea.hbm %s3331_s7, 512 }
  0x74   :  { %p2667_p6 = scmp.ne.s32.totalorder %s3331_s7, %s2666_s25  ;;  %p2670_p7 = scmp.lt.u32.totalorder %s2666_s25, %s3331_s7 }
  0x76   :  { %p2672_p8 = pnand %p2670_p7, %p2667_p6 }
  0x78   :  { %2675 = shalt.err (!%p2672_p8)
}
  0x79   :  { %s2676_s4 = scalar_lea.vmem %s89_s28, 512  ;;  %p2681_p10 = scmp.lt.s32.totalorder %s89_s28, %s89_s28 }
  0x7a   :  { %p2677_p9 = scmp.ne.s32.totalorder %s89_s28, %s2676_s4  ;;  %p2682_p11 = scmp.lt.s32.totalorder %s2676_s4, %s2676_s4 }
  0x7c   :  { %p2683_p12 = por %p2682_p11, %p2681_p10 }
  0x7e   :  { %p2684_p13 = pnand %p2683_p12, %p2677_p9 }
  0x80   :  { %2687 = shalt.err (!%p2684_p13)
}
  0x81   :  { %94 = dma.hbm_to_vmem [thread:$0]  %s3331_s7, 512, %s89_s28, [#allocation9], %s2791_s0, %s2791_s0, %s2792_s17  }
  0x82   :  { %s2801_s30 = smov [#allocation13]   ;;  %s2802_s19 = smov [#allocation16]  }
  0x83   :  { %s113_s22 = sshll.u32 %s2801_s30, 4  ;;  %s136_s16 = sshll.u32 %s2802_s19, 4  ;;  %s114_s22 = int_to_ptr.vmem [resolvable:$true] %s113_s22  ;;  %s137_s16 = int_to_ptr.vmem [resolvable:$true] %s136_s16 }
  0x84   :  { %s2688_s21 = scalar_lea.hbm %s3334_s10, 64 }
  0x85   :  { %p2689_p0 = scmp.ne.s32.totalorder %s3334_s10, %s2688_s21  ;;  %p2692_p1 = scmp.lt.u32.totalorder %s2688_s21, %s3334_s10 }
  0x87   :  { %p2694_p2 = pnand %p2692_p1, %p2689_p0 }
  0x89   :  { %2697 = shalt.err (!%p2694_p2)
}
  0x8a   :  { %s2698_s7 = scalar_lea.vmem %s114_s22, 64  ;;  %p2703_p4 = scmp.lt.s32.totalorder %s114_s22, %s114_s22 }
  0x8b   :  { %p2699_p3 = scmp.ne.s32.totalorder %s114_s22, %s2698_s7  ;;  %p2704_p5 = scmp.lt.s32.totalorder %s2698_s7, %s2698_s7 }
  0x8d   :  { %p2705_p6 = por %p2704_p5, %p2703_p4 }
  0x8f   :  { %p2706_p7 = pnand %p2705_p6, %p2699_p3 }
  0x91   :  { %2709 = shalt.err (!%p2706_p7)
}
  0x92   :  { %116 = dma.hbm_to_vmem [thread:$0]  %s3334_s10, 64, %s114_s22, [#allocation12]  }
  0x93   :  { %s2710_s29 = scalar_lea.hbm %s3337_s13, 512 }
  0x94   :  { %p2711_p8 = scmp.ne.s32.totalorder %s3337_s13, %s2710_s29  ;;  %p2714_p9 = scmp.lt.u32.totalorder %s2710_s29, %s3337_s13 }
  0x96   :  { %p2716_p10 = pnand %p2714_p9, %p2711_p8 }
  0x98   :  { %2719 = shalt.err (!%p2716_p10)
}
  0x99   :  { %s2720_s19 = scalar_lea.vmem %s137_s16, 512  ;;  %p2725_p12 = scmp.lt.s32.totalorder %s137_s16, %s137_s16 }
  0x9a   :  { %p2721_p11 = scmp.ne.s32.totalorder %s137_s16, %s2720_s19  ;;  %p2726_p13 = scmp.lt.s32.totalorder %s2720_s19, %s2720_s19 }
  0x9c   :  { %p2727_p0 = por %p2726_p13, %p2725_p12 }
  0x9e   :  { %p2728_p1 = pnand %p2727_p0, %p2721_p11 }
  0xa0   :  { %2731 = shalt.err (!%p2728_p1)
}
  0xa1   :  { %142 = dma.hbm_to_vmem [thread:$0]  %s3337_s13, 512, %s137_s16, [#allocation15], %s2791_s0, %s2791_s0, %s2792_s17  }
  0xa2   :  { %2776 = dma.done.wait [#allocation3], 128  }
  0xa3   :  { %2777 = vsyncadd [#allocation3], 4294967168 }
  0xa4   :  { %2778 = dma.done.wait [#allocation6], 512  }
  0xa5   :  { %2779 = vsyncadd [#allocation6], 4294966784 }
  0xa6   :  { %2780 = dma.done.wait [#allocation9], 1024  }
  0xa7   :  { %2781 = vsyncadd [#allocation9], 4294966272 }
  0xa8   :  { %2782 = dma.done.wait [#allocation12], 80  }
  0xa9   :  { %2783 = vsyncadd [#allocation12], 4294967216 }
  0xaa   :  { %2784 = dma.done.wait [#allocation15], 1024  }
  0xab   :  { %2785 = vsyncadd [#allocation15], 4294966272  ;;  %vm203_vm0 = vcmask 261120   ;;  %v192_v0 = vld [vmem:[#allocation8] sm:$0xff]  ;;  %v193_v1 = vld [vmem:[#allocation8 + $0x8] sm:$0xff]  ;;  %v2803_v22 = vmov 0.0  }
  0xac   :  { %v194_v2 = vld [vmem:[#allocation8 + $0x10] sm:$0xff]  ;;  %v2292_v3 = vpack.c.bf16 %v193_v1, %v192_v0  ;;  %v195_v4 = vld [vmem:[#allocation8 + $0x18] sm:$0xff]  ;;  %v176_v5 = vld [vmem:[#allocation5] sm:$0xff]  ;;  %vm377_vm1 = vcmask 130048   ;;  %vm459_vm2 = vcmask 523264   ;;  %s2804_s2 = smov 32  }
  0xad   :  { %v2296_v6 = vpack.c.bf16 %v195_v4, %v194_v2  ;;  %2103 = vmatprep.mubr.msk.f32.mxu0 %vm203_vm0, %v176_v5  ;;  %v285_v7 = vld [vmem:[#allocation10] sm:$0xff]  ;;  %v286_v8 = vld [vmem:[#allocation10 + $0x8] sm:$0xff]  ;;  %v287_v10 = vld [vmem:[#allocation10 + $0x10] sm:$0xff]  ;;  %s2805_s18 = smov 96   ;;  %vm2808_vm3 = vmmov 0   ;;  %s2809_s19 = smov [#allocation17]  }
  0xae   :  { %2293 = vmatprep.subr.bf16.mxu0 %v2292_v3  ;;  %v2300_v9 = vpack.c.bf16 %v286_v8, %v285_v7  ;;  %v288_v11 = vld [vmem:[#allocation10 + $0x18] sm:$0xff]  ;;  %v178_v12 = vld [vmem:[#allocation7] sm:$0xff]  ;;  %v181_v15 = vld [vmem:[%s3330_s6 + $0x8] sm:$0xff]  ;;  %v2806_v7 = vmov 0   ;;  %s1901_s10 = sshll.u32 %s2809_s19, 4  ;;  %s1902_s10 = int_to_ptr.vmem [resolvable:$true] %s1901_s10 }
  0xaf   :  { %2295 = vmatpush3.bf16.msra.mxu0 %v2292_v3  ;;  %v2304_v13 = vpack.c.bf16 %v288_v11, %v287_v10  ;;  %2114 = vmatprep.mubr.msk.f32.mxu1 %vm203_vm0, %v178_v12  ;;  %v180_v14 = vld [vmem:[%s3330_s6] sm:$0xff]  ;;  %v177_v18 = vld [vmem:[#allocation5 + $0x8] sm:$0xff]  ;;  %v183_v21 = vld [vmem:[%s3330_s6 + $0x18] sm:$0xff]  ;;  %s2732_s22 = scalar_lea.vmem %s1902_s10, 256  ;;  %p2737_p3 = scmp.lt.s32.totalorder %s1902_s10, %s1902_s10 }
  0xb0   :  { %2297 = vmatprep.subr.bf16.mxu0 %v2296_v6  ;;  %v1988_v16 = vld [vmem:[#allocation2] sm:$0xff]   ;;  %2301 = vmatprep.subr.bf16.mxu1 %v2300_v9  ;;  %v3030_v17 = vpack.c.bf16 %v181_v15, %v180_v14  ;;  %v182_v20 = vld [vmem:[%s3330_s6 + $0x10] sm:$0xff]  ;;  %v185_v27 = vld [vmem:[%s3330_s6 + $0x28] sm:$0xff]  ;;  %p2733_p2 = scmp.ne.s32.totalorder %s1902_s10, %s2732_s22  ;;  %p2738_p4 = scmp.lt.s32.totalorder %s2732_s22, %s2732_s22 }
  0xb1   :  { %2303 = vmatpush3.bf16.msra.mxu1 %v2300_v9  ;;  %v3032_v19 = vunpack.c.l.bf16 %v1988_v16  ;;  %v179_v23 = vld [vmem:[#allocation7 + $0x8] sm:$0xff]  ;;  %v3042_v24 = vunpack.c.h.bf16 %v1988_v16  ;;  %v3045_v25 = vpack.c.bf16 %v183_v21, %v182_v20  ;;  %v186_v29 = vld [vmem:[%s3330_s6 + $0x30] sm:$0xff]  ;;  %v187_v30 = vld [vmem:[%s3330_s6 + $0x38] sm:$0xff]  ;;  %2452 = vset.pattern.permute.xlu0 %v2806_v7 }
  0xb2   :  { %2305 = vmatprep.subr.bf16.mxu1 %v2304_v13  ;;  %v184_v26 = vld [vmem:[%s3330_s6 + $0x20] sm:$0xff]  ;;  %v3072_v31 = vpack.c.bf16 %v187_v30, %v186_v29  ;;  %v189_v44 = vld [vmem:[%s3333_s9 + $0x8] sm:$0xff]  ;;  %v190_v48 = vld [vmem:[%s3333_s9 + $0x10] sm:$0xff]  ;;  %2453 = vset.pattern.permute.xlu1 %v2806_v7  ;;  %p2739_p5 = por %p2738_p4, %p2737_p3 }
  0xb3   :  { %2299 = vmatpush3.bf16.msra.mxu0 %v2296_v6  ;;  %v3061_v28 = vpack.c.bf16 %v185_v27, %v184_v26  ;;  %v1931_v38 = vld [vmem:[%s3329_s5] ss:$0 sm:$0xff]  ;;  %v191_v49 = vld [vmem:[%s3333_s9 + $0x18] sm:$0xff]  ;;  %v685_v9 = vld [vmem:[%s3327_s3 + $0x8] sm:$0xff] }
  0xb4   :  { %2117 = vmatprep.subr.mxu0 %v2803_v22  ;;  %v188_v43 = vld [vmem:[%s3333_s9] sm:$0xff]  ;;  %v3111_v50 = vpack.c.bf16 %v191_v49, %v190_v48  ;;  %v1934_v10 = vld [vmem:[#allocation11] ss:$0 sm:$0xff]  ;;  %p2740_p6 = pnand %p2739_p5, %p2733_p2 }
  0xb5   :  { %2307 = vmatpush3.bf16.msra.mxu1 %v2304_v13  ;;  %v3099_v47 = vpack.c.bf16 %v189_v44, %v188_v43  ;;  %v684_v8 = vld [vmem:[%s3327_s3] sm:$0xff] }
  0xb6   :  { %2104 = vmatmul.mubr.msk.f32.vlgmr.msra.gmra.mrb[0].mxu0 %vm203_vm0, %v177_v18  ;;  %2309 = vmatprep.subr.bf16.mxu1 %v3030_v17 }
  0xb7   :  { %2118 = vmatpush3.msra.mxu0 %v2803_v22  ;;  %2119 = vmatprep.mubr.msk.f32.mxu0 %vm377_vm1, %v3032_v19 }
  0xb8   :  { %2115 = vmatmul.mubr.msk.f32.vlgmr.msra.gmra.mrb[0].mxu1 %vm203_vm0, %v179_v23  ;;  %2325 = vmatprep.subr.bf16.mxu0 %v3099_v47 }
  0xb9   :  { %2311 = vmatpush3.bf16.msra.mxu1 %v3030_v17 }
  0xba   :  { %2120 = vmatmul.mubr.msk.f32.vlgmr.msra.gmra.mrb[2].mxu0 %vm377_vm1, %v3042_v24  ;;  %2313 = vmatprep.subr.bf16.mxu1 %v3045_v25 }
  0xbb   :  { %2327 = vmatpush3.bf16.msra.mxu0 %v3099_v47 }
  0xbc   :  { %2329 = vmatprep.subr.bf16.mxu0 %v3111_v50 }
  0xbd   :  { %2315 = vmatpush3.bf16.msra.mxu1 %v3045_v25 }
  0xbe   :  { %2317 = vmatprep.subr.bf16.mxu1 %v3061_v28 }
  0xbf   :  { %2331 = vmatpush3.bf16.msra.mxu0 %v3111_v50 }
  0xc1   :  { %2319 = vmatpush3.bf16.msra.mxu1 %v3061_v28 }
  0xc2   :  { %2321 = vmatprep.subr.bf16.mxu1 %v3072_v31 }
  0xc5   :  { %2323 = vmatpush3.bf16.msra.mxu1 %v3072_v31 }
  0xc6   :  { %2353 = vmatprep.subr.bf16.mxu1 %v3099_v47 }
 0x189   :  { %v2105_v32 = vpop.f32.mrb[0].mxu0 }
 0x18a   :  { %v276_v33 = vpop.f32.mrb[1].mxu0  ;;  %v3087_v39 = vadd.f32 %v2105_v32, %v1931_v38 }
 0x18b   :  { %v3076_v34 = vpop.f32.mrb[0].mxu1  ;;  %v3089_v40 = vadd.f32 %v1931_v38, %v276_v33 }
 0x18c   :  { %v3078_v35 = vpop.f32.mrb[1].mxu1  ;;  %v3130_v11 = vadd.f32 %v3076_v34, %v1934_v10 }
 0x18d   :  { %v2121_v36 = vpop.f32.mrb[2].mxu0  ;;  %v3133_v12 = vadd.f32 %v1934_v10, %v3078_v35 }
 0x18e   :  { %v450_v37 = vpop.f32.mrb[3].mxu0 }
 0x18f   :  { %557 = vrot.lane.b32.xlu0 %v450_v37, %s2804_s2  ;;  %2138 = vmatprep.mubr.msk.f32.mxu1 %vm459_vm2, %v450_v37 }
 0x190   :  { %2139 = vmatmul.mubr.msk.f32.vlgmr.msra.gmra.mrb[2].mxu1 %vm459_vm2, %v2121_v36 }
 0x191   :  { %2355 = vmatpush3.bf16.msra.mxu1 %v3099_v47 }
 0x192   :  { %2357 = vmatprep.subr.bf16.mxu1 %v3111_v50 }
 0x193   :  { %559 = vrot.lane.b32.xlu0 %v2121_v36, %s2804_s2 }
 0x195   :  { %2359 = vmatpush3.bf16.msra.mxu1 %v3111_v50 }
 0x197   :  { %688 = vperm.xlu0 %2452, %v684_v8  }
 0x201   :  { %v558_v51 = vpop.permute.xlu0 %557 }
 0x205   :  { %v560_v55 = vpop.permute.xlu0 %559 }
 0x216   :  { %v689_v34 = vpop.permute.xlu0 %688 }
 0x263   :  { %v2140_v41 = vpop.f32.mrb[2].mxu1 }
 0x264   :  { %v532_v42 = vpop.f32.mrb[3].mxu1  ;;  %v542_v45 = vadd.f32 %v2140_v41, %v3087_v39 }
 0x265   :  { %v541_v46 = vadd.f32 %v532_v42, %v3089_v40 }
 0x266   :  { %v1942_v58 = vmul.f32 -1.442695, %v542_v45 }
 0x267   :  { %2454 = vtanh.f32 %v541_v46  ;;  %v1941_v57 = vmul.f32 -1.442695, %v541_v46 }
 0x268   :  { %2456 = vtanh.f32 %v542_v45 }
 0x269   :  { %2458 = vpow2.f32 %v1941_v57 }
 0x26a   :  { %2460 = vpow2.f32 %v1942_v58 }
 0x271   :  { %v2455_v52 = vpop.eup %2454 }
 0x272   :  { %v563_v53 = vsub.f32 %v2455_v52, %v558_v51  ;;  %v2457_v54 = vpop.eup %2456 }
 0x273   :  { %v564_v56 = vsub.f32 %v2457_v54, %v560_v55  ;;  %v2459_v59 = vpop.eup %2458 }
 0x274   :  { %567 = vrot.lane.b32.xlu1 %v563_v53, %s2805_s18  ;;  %v549_v60 = vadd.f32 1.0, %v2459_v59  ;;  %v2461_v61 = vpop.eup %2460  ;;  %v1958_v59 = vld [vmem:[%s3327_s3 + $0x18] sm:$0xff] }
 0x275   :  { %v550_v62 = vadd.f32 1.0, %v2461_v61 }
 0x276   :  { %2462 = vrcp.f32 %v549_v60  ;;  %v1957_v60 = vld [vmem:[%s3327_s3 + $0x10] sm:$0xff] }
 0x277   :  { %2464 = vrcp.f32 %v550_v62 }
 0x278   :  { %569 = vrot.lane.b32.xlu1 %v564_v56, %s2805_s18 }
 0x27c   :  { %693 = vperm.xlu1 %2453, %v685_v9  }
 0x280   :  { %v2463_v63 = vpop.eup %2462 }
 0x281   :  { %v2465_v3 = vpop.eup %2464 }
 0x2e6   :  { %v568_v0 = vpop.permute.xlu1 %567 }
 0x2e7   :  { %v573_v1 = vmul.f32 %v2463_v63, %v568_v0 }
 0x2e9   :  { %v575_v2 = vadd.f32 %v573_v1, %v450_v37 }
 0x2ea   :  { %v570_v4 = vpop.permute.xlu1 %569 }
 0x2eb   :  { %v574_v5 = vmul.f32 %v2465_v3, %v570_v4  ;;  %2149 = vmatprep.mubr.msk.f32.mxu0 %vm203_vm0, %v575_v2 }
 0x2ed   :  { %v576_v6 = vadd.f32 %v2121_v36, %v574_v5 }
 0x2ef   :  { %2150 = vmatmul.mubr.msk.f32.vlgmr.msra.gmra.mrb[4].mxu0 %vm203_vm0, %v576_v6 }
 0x2f0   :  { %2156 = vmatprep.mubr.msk.f32.mxu0 %vm377_vm1, %v3032_v19 }
 0x2fb   :  { %v694_v35 = vpop.permute.xlu1 %693 }
 0x3c2   :  { %v2151_v13 = vpop.f32.mrb[4].mxu0 }
 0x3c3   :  { %v659_v14 = vadd.f32 %v2151_v13, %v3130_v11  ;;  %v649_v15 = vpop.f32.mrb[5].mxu0 }
 0x3c4   :  { %v658_v16 = vadd.f32 %v649_v15, %v3133_v12 }
 0x3c5   :  { %v1946_v18 = vmul.f32 -1.442695, %v659_v14 }
 0x3c6   :  { %v1945_v20 = vmul.f32 -1.442695, %v658_v16 }
 0x3c7   :  { %2466 = vpow2.f32 %v1946_v18 }
 0x3c8   :  { %2468 = vpow2.f32 %v1945_v20 }
 0x3d1   :  { %v2467_v21 = vpop.eup %2466 }
 0x3d2   :  { %v2469_v23 = vpop.eup %2468  ;;  %v667_v26 = vadd.f32 1.0, %v2467_v21 }
 0x3d3   :  { %v666_v27 = vadd.f32 1.0, %v2469_v23 }
 0x3d4   :  { %2470 = vrcp.f32 %v667_v26 }
 0x3d5   :  { %2472 = vrcp.f32 %v666_v27 }
 0x3de   :  { %v2471_v29 = vpop.eup %2470 }
 0x3df   :  { %v2473_v30 = vpop.eup %2472  ;;  %v673_v32 = vmul.f32 %v2471_v29, %v576_v6 }
 0x3e0   :  { %v672_v33 = vmul.f32 %v2473_v30, %v575_v2 }
 0x3e1   :  { %678 = vrot.lane.b32.xlu0 %v673_v32, %s2804_s2 }
 0x3e2   :  { %676 = vrot.lane.b32.xlu1 %v672_v33, %s2804_s2 }
 0x453   :  { %v679_v36 = vpop.permute.xlu0 %678 }
 0x454   :  { %v683_v37 = vsel %vm203_vm0, %v576_v6, %v679_v36  ;;  %v677_v38 = vpop.permute.xlu1 %676 }
 0x455   :  { %v3140_v41 = vmul.f32 %v694_v35, %v683_v37  ;;  %v682_v42 = vsel %vm203_vm0, %v575_v2, %v677_v38 }
 0x456   :  { %v3143_v43 = vmul.f32 %v689_v34, %v682_v42 }
 0x458   :  { %v2332_v44 = vpack.c.bf16 %v3140_v41, %v3143_v43 }
 0x45a   :  { %2333 = vmatprep.subr.bf16.mxu0 %v2332_v44 }
 0x45b   :  { %2335 = vmatpush3.bf16.msra.mxu0 %v2332_v44 }
 0x45c   :  { %2337 = vmatprep.subr.bf16.mxu0 %v3030_v17 }
 0x45e   :  { %2157 = vmatmul.mubr.msk.f32.vlgmr.msra.gmra.mrb[6].mxu0 %vm377_vm1, %v3042_v24 }
 0x45f   :  { %2339 = vmatpush3.bf16.msra.mxu0 %v3030_v17 }
 0x460   :  { %2341 = vmatprep.subr.bf16.mxu0 %v3045_v25 }
 0x463   :  { %2343 = vmatpush3.bf16.msra.mxu0 %v3045_v25 }
 0x464   :  { %2345 = vmatprep.subr.bf16.mxu0 %v3061_v28 }
 0x467   :  { %2347 = vmatpush3.bf16.msra.mxu0 %v3061_v28 }
 0x468   :  { %2349 = vmatprep.subr.bf16.mxu0 %v3072_v31 }
 0x46b   :  { %2351 = vmatpush3.bf16.msra.mxu0 %v3072_v31 }
 0x46c   :  { %2381 = vmatprep.subr.bf16.mxu0 %v3099_v47 }
 0x531   :  { %v2158_v45 = vpop.f32.mrb[6].mxu0 }
 0x532   :  { %874 = vrot.lane.b32.xlu0 %v2158_v45, %s2804_s2  ;;  %v766_v46 = vpop.f32.mrb[7].mxu0 }
 0x533   :  { %872 = vrot.lane.b32.xlu1 %v766_v46, %s2804_s2  ;;  %2175 = vmatprep.mubr.msk.f32.mxu0 %vm459_vm2, %v766_v46 }
 0x534   :  { %2176 = vmatmul.mubr.msk.f32.vlgmr.msra.gmra.mrb[8].mxu0 %vm459_vm2, %v2158_v45 }
 0x535   :  { %2383 = vmatpush3.bf16.msra.mxu0 %v3099_v47 }
 0x536   :  { %2385 = vmatprep.subr.bf16.mxu0 %v3111_v50 }
 0x539   :  { %2387 = vmatpush3.bf16.msra.mxu0 %v3111_v50 }
 0x5a4   :  { %v875_v54 = vpop.permute.xlu0 %874 }
 0x5a5   :  { %v873_v56 = vpop.permute.xlu1 %872 }
 0x607   :  { %v2177_v48 = vpop.f32.mrb[8].mxu0 }
 0x608   :  { %v857_v49 = vadd.f32 %v2177_v48, %v3087_v39  ;;  %v847_v51 = vpop.f32.mrb[9].mxu0 }
 0x609   :  { %v856_v52 = vadd.f32 %v847_v51, %v3089_v40 }
 0x60a   :  { %2474 = vtanh.f32 %v857_v49  ;;  %v1952_v61 = vmul.f32 -1.442695, %v857_v49 }
 0x60b   :  { %2476 = vtanh.f32 %v856_v52  ;;  %v1951_v62 = vmul.f32 -1.442695, %v856_v52 }
 0x60c   :  { %2478 = vpow2.f32 %v1952_v61 }
 0x60d   :  { %2480 = vpow2.f32 %v1951_v62 }
 0x614   :  { %v2475_v53 = vpop.eup %2474 }
 0x615   :  { %v2477_v55 = vpop.eup %2476  ;;  %v879_v57 = vsub.f32 %v2475_v53, %v875_v54 }
 0x616   :  { %v878_v58 = vsub.f32 %v2477_v55, %v873_v56  ;;  %v2479_v63 = vpop.eup %2478 }
 0x617   :  { %884 = vrot.lane.b32.xlu0 %v879_v57, %s2805_s18  ;;  %v2481_v0 = vpop.eup %2480  ;;  %v865_v1 = vadd.f32 1.0, %v2479_v63 }
 0x618   :  { %882 = vrot.lane.b32.xlu1 %v878_v58, %s2805_s18  ;;  %v864_v2 = vadd.f32 1.0, %v2481_v0 }
 0x619   :  { %2482 = vrcp.f32 %v865_v1 }
 0x61a   :  { %2484 = vrcp.f32 %v864_v2 }
 0x61b   :  { %1011 = vperm.xlu0 %2452, %v1958_v59  }
 0x61c   :  { %1006 = vperm.xlu1 %2453, %v1957_v60  }
 0x623   :  { %v2483_v3 = vpop.eup %2482 }
 0x624   :  { %v2485_v5 = vpop.eup %2484 }
 0x689   :  { %v885_v4 = vpop.permute.xlu0 %884 }
 0x68a   :  { %v889_v6 = vmul.f32 %v2483_v3, %v885_v4  ;;  %v883_v7 = vpop.permute.xlu1 %882 }
 0x68b   :  { %v888_v8 = vmul.f32 %v2485_v5, %v883_v7 }
 0x68c   :  { %v891_v9 = vadd.f32 %v2158_v45, %v889_v6 }
 0x68d   :  { %v890_v10 = vadd.f32 %v888_v8, %v766_v46 }
 0x68f   :  { %2186 = vmatprep.mubr.msk.f32.mxu1 %vm203_vm0, %v890_v10 }
 0x690   :  { %2187 = vmatmul.mubr.msk.f32.vlgmr.msra.gmra.mrb[4].mxu1 %vm203_vm0, %v891_v9 }
 0x691   :  { %2193 = vmatprep.mubr.msk.f32.mxu1 %vm377_vm1, %v3032_v19 }
 0x69a   :  { %v1012_v34 = vpop.permute.xlu0 %1011 }
 0x69b   :  { %v1007_v35 = vpop.permute.xlu1 %1006 }
 0x763   :  { %v2188_v13 = vpop.f32.mrb[4].mxu1 }
 0x764   :  { %v974_v14 = vadd.f32 %v2188_v13, %v3130_v11  ;;  %v964_v15 = vpop.f32.mrb[5].mxu1 }
 0x765   :  { %v973_v16 = vadd.f32 %v964_v15, %v3133_v12 }
 0x766   :  { %v1956_v18 = vmul.f32 -1.442695, %v974_v14 }
 0x767   :  { %v1955_v20 = vmul.f32 -1.442695, %v973_v16 }
 0x768   :  { %2486 = vpow2.f32 %v1956_v18 }
 0x769   :  { %2488 = vpow2.f32 %v1955_v20 }
 0x772   :  { %v2487_v21 = vpop.eup %2486 }
 0x773   :  { %v2489_v23 = vpop.eup %2488  ;;  %v982_v26 = vadd.f32 1.0, %v2487_v21 }
 0x774   :  { %v981_v27 = vadd.f32 1.0, %v2489_v23 }
 0x775   :  { %2490 = vrcp.f32 %v982_v26 }
 0x776   :  { %2492 = vrcp.f32 %v981_v27 }
 0x77f   :  { %v2491_v29 = vpop.eup %2490 }
 0x780   :  { %v2493_v30 = vpop.eup %2492  ;;  %v988_v32 = vmul.f32 %v2491_v29, %v891_v9 }
 0x781   :  { %v987_v33 = vmul.f32 %v2493_v30, %v890_v10 }
 0x782   :  { %993 = vrot.lane.b32.xlu0 %v988_v32, %s2804_s2 }
 0x783   :  { %991 = vrot.lane.b32.xlu1 %v987_v33, %s2804_s2 }
 0x7f4   :  { %v994_v36 = vpop.permute.xlu0 %993 }
 0x7f5   :  { %v998_v37 = vsel %vm203_vm0, %v891_v9, %v994_v36  ;;  %v992_v38 = vpop.permute.xlu1 %991 }
 0x7f6   :  { %v1003_v42 = vsub.f32 %v998_v37, %v3140_v41  ;;  %v997_v44 = vsel %vm203_vm0, %v890_v10, %v992_v38 }
 0x7f7   :  { %v1002_v45 = vsub.f32 %v997_v44, %v3143_v43 }
 0x7f8   :  { %v1015_v46 = vmul.f32 %v1012_v34, %v1003_v42 }
 0x7f9   :  { %v1014_v48 = vmul.f32 %v1007_v35, %v1002_v45 }
 0x7fa   :  { %v3188_v49 = vadd.f32 %v1015_v46, %v3140_v41 }
 0x7fb   :  { %v3191_v51 = vadd.f32 %v1014_v48, %v3143_v43 }
 0x7fd   :  { %v2360_v52 = vpack.c.bf16 %v3188_v49, %v3191_v51 }
 0x7ff   :  { %2361 = vmatprep.subr.bf16.mxu1 %v2360_v52 }
 0x800   :  { %2363 = vmatpush3.bf16.msra.mxu1 %v2360_v52 }
 0x801   :  { %2365 = vmatprep.subr.bf16.mxu1 %v3030_v17 }
 0x803   :  { %2194 = vmatmul.mubr.msk.f32.vlgmr.msra.gmra.mrb[6].mxu1 %vm377_vm1, %v3042_v24 }
 0x804   :  { %2367 = vmatpush3.bf16.msra.mxu1 %v3030_v17 }
 0x805   :  { %2369 = vmatprep.subr.bf16.mxu1 %v3045_v25 }
 0x808   :  { %2371 = vmatpush3.bf16.msra.mxu1 %v3045_v25 }
 0x809   :  { %2373 = vmatprep.subr.bf16.mxu1 %v3061_v28 }
 0x80c   :  { %2375 = vmatpush3.bf16.msra.mxu1 %v3061_v28 }
 0x80d   :  { %2377 = vmatprep.subr.bf16.mxu1 %v3072_v31 }
 0x810   :  { %2379 = vmatpush3.bf16.msra.mxu1 %v3072_v31 }
 0x811   :  { %2409 = vmatprep.subr.bf16.mxu1 %v3099_v47 }
 0x8d6   :  { %v2195_v41 = vpop.f32.mrb[6].mxu1 }
 0x8d7   :  { %1192 = vrot.lane.b32.xlu0 %v2195_v41, %s2804_s2  ;;  %v1084_v43 = vpop.f32.mrb[7].mxu1 }
 0x8d8   :  { %1190 = vrot.lane.b32.xlu1 %v1084_v43, %s2804_s2  ;;  %2212 = vmatprep.mubr.msk.f32.mxu1 %vm459_vm2, %v1084_v43 }
 0x8d9   :  { %2213 = vmatmul.mubr.msk.f32.vlgmr.msra.gmra.mrb[8].mxu1 %vm459_vm2, %v2195_v41 }
 0x8da   :  { %2411 = vmatpush3.bf16.msra.mxu1 %v3099_v47  ;;  %v1970_v47 = vld [vmem:[%s3327_s3 + $0x28] sm:$0xff] }
 0x8db   :  { %2413 = vmatprep.subr.bf16.mxu1 %v3111_v50 }
 0x8de   :  { %2415 = vmatpush3.bf16.msra.mxu1 %v3111_v50  ;;  %v1969_v50 = vld [vmem:[%s3327_s3 + $0x20] sm:$0xff] }
 0x949   :  { %v1193_v58 = vpop.permute.xlu0 %1192 }
 0x94a   :  { %v1191_v60 = vpop.permute.xlu1 %1190 }
 0x9ac   :  { %v2214_v53 = vpop.f32.mrb[8].mxu1 }
 0x9ad   :  { %v1175_v54 = vadd.f32 %v2214_v53, %v3087_v39  ;;  %v1165_v55 = vpop.f32.mrb[9].mxu1 }
 0x9ae   :  { %v1174_v56 = vadd.f32 %v1165_v55, %v3089_v40 }
 0x9af   :  { %2494 = vtanh.f32 %v1175_v54  ;;  %v1964_v63 = vmul.f32 -1.442695, %v1175_v54 }
 0x9b0   :  { %2496 = vtanh.f32 %v1174_v56  ;;  %v1963_v0 = vmul.f32 -1.442695, %v1174_v56 }
 0x9b1   :  { %2498 = vpow2.f32 %v1964_v63 }
 0x9b2   :  { %2500 = vpow2.f32 %v1963_v0 }
 0x9b9   :  { %v2495_v57 = vpop.eup %2494 }
 0x9ba   :  { %v2497_v59 = vpop.eup %2496  ;;  %v1197_v61 = vsub.f32 %v2495_v57, %v1193_v58 }
 0x9bb   :  { %v1196_v62 = vsub.f32 %v2497_v59, %v1191_v60  ;;  %v2499_v1 = vpop.eup %2498  ;;  %v1982_v59 = vld [vmem:[%s3327_s3 + $0x38] sm:$0xff] }
 0x9bc   :  { %1202 = vrot.lane.b32.xlu0 %v1197_v61, %s2805_s18  ;;  %v2501_v2 = vpop.eup %2500  ;;  %v1183_v3 = vadd.f32 1.0, %v2499_v1 }
 0x9bd   :  { %1200 = vrot.lane.b32.xlu1 %v1196_v62, %s2805_s18  ;;  %v1182_v4 = vadd.f32 1.0, %v2501_v2 }
 0x9be   :  { %2502 = vrcp.f32 %v1183_v3 }
 0x9bf   :  { %2504 = vrcp.f32 %v1182_v4 }
 0x9c0   :  { %1329 = vperm.xlu0 %2452, %v1970_v47  }
 0x9c1   :  { %1324 = vperm.xlu1 %2453, %v1969_v50  }
 0x9c8   :  { %v2503_v5 = vpop.eup %2502 }
 0x9c9   :  { %v2505_v7 = vpop.eup %2504 }
 0xa2e   :  { %v1203_v6 = vpop.permute.xlu0 %1202 }
 0xa2f   :  { %v1207_v8 = vmul.f32 %v2503_v5, %v1203_v6  ;;  %v1201_v9 = vpop.permute.xlu1 %1200 }
 0xa30   :  { %v1206_v10 = vmul.f32 %v2505_v7, %v1201_v9 }
 0xa31   :  { %v1209_v13 = vadd.f32 %v2195_v41, %v1207_v8 }
 0xa32   :  { %v1208_v14 = vadd.f32 %v1206_v10, %v1084_v43 }
 0xa34   :  { %2223 = vmatprep.mubr.msk.f32.mxu0 %vm203_vm0, %v1208_v14 }
 0xa35   :  { %2224 = vmatmul.mubr.msk.f32.vlgmr.msra.gmra.mrb[10].mxu0 %vm203_vm0, %v1209_v13 }
 0xa36   :  { %2230 = vmatprep.mubr.msk.f32.mxu0 %vm377_vm1, %v3032_v19 }
 0xa3f   :  { %v1330_v35 = vpop.permute.xlu0 %1329 }
 0xa40   :  { %v1325_v36 = vpop.permute.xlu1 %1324 }
 0xb08   :  { %v2225_v15 = vpop.f32.mrb[10].mxu0 }
 0xb09   :  { %v1292_v16 = vadd.f32 %v2225_v15, %v3130_v11  ;;  %v1282_v18 = vpop.f32.mrb[11].mxu0 }
 0xb0a   :  { %v1291_v20 = vadd.f32 %v1282_v18, %v3133_v12 }
 0xb0b   :  { %v1968_v21 = vmul.f32 -1.442695, %v1292_v16 }
 0xb0c   :  { %v1967_v23 = vmul.f32 -1.442695, %v1291_v20 }
 0xb0d   :  { %2506 = vpow2.f32 %v1968_v21  ;;  %v2807_v21 = vmov 0.0|0.0  }
 0xb0e   :  { %2508 = vpow2.f32 %v1967_v23  ;;  %2416 = vmatprep.subr.bf16.mxu1 %v2807_v21 }
 0xb17   :  { %v2507_v26 = vpop.eup %2506 }
 0xb18   :  { %v2509_v27 = vpop.eup %2508  ;;  %v1300_v29 = vadd.f32 1.0, %v2507_v26 }
 0xb19   :  { %v1299_v30 = vadd.f32 1.0, %v2509_v27 }
 0xb1a   :  { %2510 = vrcp.f32 %v1300_v29  ;;  %v1733_v29 = vld [vmem:[#allocation14 + $0x8] sm:$0xff] }
 0xb1b   :  { %2512 = vrcp.f32 %v1299_v30 }
 0xb24   :  { %v2511_v32 = vpop.eup %2510 }
 0xb25   :  { %v2513_v33 = vpop.eup %2512  ;;  %v1306_v34 = vmul.f32 %v2511_v32, %v1209_v13  ;;  %v1734_v32 = vld [vmem:[#allocation14 + $0x10] sm:$0xff] }
 0xb26   :  { %v1305_v19 = vmul.f32 %v2513_v33, %v1208_v14  ;;  %v1735_v33 = vld [vmem:[#allocation14 + $0x18] sm:$0xff] }
 0xb27   :  { %1311 = vrot.lane.b32.xlu0 %v1306_v34, %s2804_s2  ;;  %v2429_v34 = vpack.c.bf16 %v1735_v33, %v1734_v32 }
 0xb28   :  { %1309 = vrot.lane.b32.xlu1 %v1305_v19, %s2804_s2 }
 0xb99   :  { %v1312_v37 = vpop.permute.xlu0 %1311 }
 0xb9a   :  { %v1316_v38 = vsel %vm203_vm0, %v1209_v13, %v1312_v37  ;;  %v1310_v42 = vpop.permute.xlu1 %1309 }
 0xb9b   :  { %v1321_v44 = vsub.f32 %v1316_v38, %v3188_v49  ;;  %v1315_v45 = vsel %vm203_vm0, %v1208_v14, %v1310_v42 }
 0xb9c   :  { %v1320_v46 = vsub.f32 %v1315_v45, %v3191_v51 }
 0xb9d   :  { %v1333_v48 = vmul.f32 %v1330_v35, %v1321_v44 }
 0xb9e   :  { %v1332_v52 = vmul.f32 %v1325_v36, %v1320_v46 }
 0xb9f   :  { %v3236_v41 = vadd.f32 %v1333_v48, %v3188_v49 }
 0xba0   :  { %v3239_v43 = vadd.f32 %v1332_v52, %v3191_v51 }
 0xba2   :  { %v2388_v53 = vpack.c.bf16 %v3236_v41, %v3239_v43 }
 0xba4   :  { %2389 = vmatprep.subr.bf16.mxu0 %v2388_v53 }
 0xba5   :  { %2391 = vmatpush3.bf16.msra.mxu0 %v2388_v53 }
 0xba6   :  { %2393 = vmatprep.subr.bf16.mxu0 %v3030_v17 }
 0xba8   :  { %2231 = vmatmul.mubr.msk.f32.vlgmr.msra.gmra.mrb[12].mxu0 %vm377_vm1, %v3042_v24 }
 0xba9   :  { %2395 = vmatpush3.bf16.msra.mxu0 %v3030_v17 }
 0xbaa   :  { %2397 = vmatprep.subr.bf16.mxu0 %v3045_v25 }
 0xbad   :  { %2399 = vmatpush3.bf16.msra.mxu0 %v3045_v25 }
 0xbae   :  { %2401 = vmatprep.subr.bf16.mxu0 %v3061_v28 }
 0xbb1   :  { %2403 = vmatpush3.bf16.msra.mxu0 %v3061_v28 }
 0xbb2   :  { %2405 = vmatprep.subr.bf16.mxu0 %v3072_v31 }
 0xbb5   :  { %2407 = vmatpush3.bf16.msra.mxu0 %v3072_v31 }
 0xbb6   :  { %2425 = vmatprep.subr.bf16.mxu0 %v2807_v21 }
 0xc7b   :  { %v2232_v49 = vpop.f32.mrb[12].mxu0 }
 0xc7c   :  { %1510 = vrot.lane.b32.xlu0 %v2232_v49, %s2804_s2  ;;  %v1402_v51 = vpop.f32.mrb[13].mxu0 }
 0xc7d   :  { %1508 = vrot.lane.b32.xlu1 %v1402_v51, %s2804_s2  ;;  %2249 = vmatprep.mubr.msk.f32.mxu0 %vm459_vm2, %v1402_v51 }
 0xc7e   :  { %2250 = vmatmul.mubr.msk.f32.vlgmr.msra.gmra.mrb[14].mxu0 %vm459_vm2, %v2232_v49 }
 0xc7f   :  { %2289 = vmatprep.mubr.msk.f32.mxu0 %vm2808_vm3, %v2803_v22 }
 0xcee   :  { %v1511_v31 = vpop.permute.xlu0 %1510 }
 0xcef   :  { %v1509_v56 = vpop.permute.xlu1 %1508 }
 0xd51   :  { %v2251_v17 = vpop.f32.mrb[14].mxu0 }
 0xd52   :  { %v1493_v24 = vadd.f32 %v2251_v17, %v3087_v39  ;;  %v1483_v25 = vpop.f32.mrb[15].mxu0  ;;  %v1981_v39 = vld [vmem:[%s3327_s3 + $0x30] sm:$0xff] }
 0xd53   :  { %v1492_v28 = vadd.f32 %v1483_v25, %v3089_v40  ;;  %v1737_v17 = vld [vmem:[#allocation16 + $0x8] sm:$0xff] }
 0xd54   :  { %2514 = vtanh.f32 %v1493_v24  ;;  %v1976_v40 = vmul.f32 -1.442695, %v1493_v24 }
 0xd55   :  { %2516 = vtanh.f32 %v1492_v28  ;;  %v1975_v60 = vmul.f32 -1.442695, %v1492_v28 }
 0xd56   :  { %2518 = vpow2.f32 %v1976_v40 }
 0xd57   :  { %2520 = vpow2.f32 %v1975_v60 }
 0xd5e   :  { %v2515_v54 = vpop.eup %2514 }
 0xd5f   :  { %v2517_v55 = vpop.eup %2516  ;;  %v1515_v57 = vsub.f32 %v2515_v54, %v1511_v31  ;;  %v1738_v54 = vld [vmem:[#allocation16 + $0x10] sm:$0xff]  ;;  %v1739_v31 = vld [vmem:[#allocation16 + $0x18] sm:$0xff] }
 0xd60   :  { %v1514_v58 = vsub.f32 %v2517_v55, %v1509_v56  ;;  %v2519_v61 = vpop.eup %2518 }
 0xd61   :  { %1520 = vrot.lane.b32.xlu0 %v1515_v57, %s2805_s18  ;;  %v2521_v62 = vpop.eup %2520  ;;  %v1501_v47 = vadd.f32 1.0, %v2519_v61 }
 0xd62   :  { %1518 = vrot.lane.b32.xlu1 %v1514_v58, %s2805_s18  ;;  %v1500_v50 = vadd.f32 1.0, %v2521_v62 }
 0xd63   :  { %2522 = vrcp.f32 %v1501_v47 }
 0xd64   :  { %2524 = vrcp.f32 %v1500_v50 }
 0xd65   :  { %1647 = vperm.xlu0 %2452, %v1982_v59  }
 0xd66   :  { %1642 = vperm.xlu1 %2453, %v1981_v39  }
 0xd6d   :  { %v2523_v63 = vpop.eup %2522 }
 0xd6e   :  { %v2525_v1 = vpop.eup %2524 }
 0xdd3   :  { %v1521_v0 = vpop.permute.xlu0 %1520 }
 0xdd4   :  { %v1525_v2 = vmul.f32 %v2523_v63, %v1521_v0  ;;  %v1519_v3 = vpop.permute.xlu1 %1518 }
 0xdd5   :  { %v1524_v4 = vmul.f32 %v2525_v1, %v1519_v3 }
 0xdd6   :  { %v1527_v5 = vadd.f32 %v2232_v49, %v1525_v2  ;;  %v1656_v49 = vld [vmem:[#allocation13] sm:$0xf] }
 0xdd7   :  { %v1526_v6 = vadd.f32 %v1524_v4, %v1402_v51  ;;  %v1736_v51 = vld [vmem:[#allocation16] sm:$0xff]  ;;  %v1657_v25 = vunpack.c.l.bf16 %v1656_v49 }
 0xdd8   :  { %v2420_v28 = vpack.c.bf16 %v1737_v17, %v1736_v51 }
 0xdd9   :  { %2260 = vmatprep.mubr.msk.f32.mxu1 %vm203_vm0, %v1526_v6 }
 0xdda   :  { %2261 = vmatmul.mubr.msk.f32.vlgmr.msra.gmra.mrb[10].mxu1 %vm203_vm0, %v1527_v5 }
 0xddb   :  { %2267 = vmatprep.mubr.msk.f32.mxu1 %vm2808_vm3, %v2803_v22 }
 0xde4   :  { %v1648_v19 = vpop.permute.xlu0 %1647 }
 0xde5   :  { %v1643_v35 = vpop.permute.xlu1 %1642 }
 0xead   :  { %v2262_v7 = vpop.f32.mrb[10].mxu1 }
 0xeae   :  { %v1610_v8 = vadd.f32 %v2262_v7, %v3130_v11  ;;  %v1600_v9 = vpop.f32.mrb[11].mxu1 }
 0xeaf   :  { %v1609_v10 = vadd.f32 %v1600_v9, %v3133_v12  ;;  %v1732_v12 = vld [vmem:[#allocation14] sm:$0xff] }
 0xeb0   :  { %v1980_v13 = vmul.f32 -1.442695, %v1610_v8  ;;  %v2426_v30 = vpack.c.bf16 %v1733_v29, %v1732_v12 }
 0xeb1   :  { %v1979_v14 = vmul.f32 -1.442695, %v1609_v10 }
 0xeb2   :  { %2526 = vpow2.f32 %v1980_v13  ;;  %2427 = vmatpush3.bf16.msra.mxu0 %v2426_v30 }
 0xeb3   :  { %2528 = vpow2.f32 %v1979_v14  ;;  %2428 = vmatprep.subr.bf16.mxu0 %v2807_v21 }
 0xeb6   :  { %2430 = vmatpush3.bf16.msra.mxu0 %v2429_v34 }
 0xebc   :  { %v2527_v15 = vpop.eup %2526 }
 0xebd   :  { %v2529_v16 = vpop.eup %2528  ;;  %v1618_v18 = vadd.f32 1.0, %v2527_v15 }
 0xebe   :  { %v1617_v20 = vadd.f32 1.0, %v2529_v16 }
 0xebf   :  { %2530 = vrcp.f32 %v1618_v18 }
 0xec0   :  { %2532 = vrcp.f32 %v1617_v20 }
 0xec9   :  { %v2531_v23 = vpop.eup %2530 }
 0xeca   :  { %v2533_v26 = vpop.eup %2532  ;;  %v1624_v27 = vmul.f32 %v2531_v23, %v1527_v5 }
 0xecb   :  { %v1623_v11 = vmul.f32 %v2533_v26, %v1526_v6 }
 0xecc   :  { %1629 = vrot.lane.b32.xlu0 %v1624_v27, %s2804_s2 }
 0xecd   :  { %1627 = vrot.lane.b32.xlu1 %v1623_v11, %s2804_s2 }
 0xf3e   :  { %v1630_v36 = vpop.permute.xlu0 %1629 }
 0xf3f   :  { %v1634_v37 = vsel %vm203_vm0, %v1527_v5, %v1630_v36  ;;  %v1628_v38 = vpop.permute.xlu1 %1627 }
 0xf40   :  { %v1639_v42 = vsub.f32 %v1634_v37, %v3236_v41  ;;  %v1633_v44 = vsel %vm203_vm0, %v1526_v6, %v1628_v38 }
 0xf41   :  { %v1638_v45 = vsub.f32 %v1633_v44, %v3239_v43 }
 0xf42   :  { %v1651_v46 = vmul.f32 %v1648_v19, %v1639_v42 }
 0xf43   :  { %v1650_v48 = vmul.f32 %v1643_v35, %v1638_v45 }
 0xf44   :  { %v1653_v52 = vadd.f32 %v1651_v46, %v3236_v41  ;;  %v2423_v41 = vpack.c.bf16 %v1739_v31, %v1738_v54 }
 0xf45   :  { %v1652_v53 = vadd.f32 %v1650_v48, %v3239_v43  ;;  %v1731_v43 = vld [vmem:[%s3335_s11] sm:$0xff] }
 0xf46   :  { %1655 = vst.msk [vmem:[#allocation17 + $0x8] sm:$0xff] %vm203_vm0, %v1653_v52  ;;  %2290 = vmatmul.mubr.msk.f32.vlgmr.msra.gmra.mrb[16].mxu0 %vm203_vm0, %v1731_v43 }
 0xf47   :  { %1654 = vst.msk [vmem:[#allocation17] sm:$0xff] %vm203_vm0, %v1652_v53  ;;  %v2417_v24 = vpack.c.bf16 %v1653_v52, %v1652_v53 }
 0xf49   :  { %2418 = vmatpush3.bf16.msra.mxu1 %v2417_v24 }
 0xf4a   :  { %2419 = vmatprep.subr.bf16.mxu1 %v2807_v21 }
 0xf4c   :  { %2268 = vmatmul.mubr.msk.f32.vlgmr.msra.gmra.mrb[12].mxu1 %vm377_vm1, %v1657_v25 }
 0xf4d   :  { %2421 = vmatpush3.bf16.msra.mxu1 %v2420_v28  ;;  %2278 = vmatprep.mubr.msk.f32.mxu1 %vm2808_vm3, %v2803_v22 }
 0xf4e   :  { %2422 = vmatprep.subr.bf16.mxu1 %v2807_v21 }
 0xf51   :  { %2424 = vmatpush3.bf16.msra.mxu1 %v2423_v41 }
0x1019   :  { %v1882_v57 = vpop.f32.mrb[16].mxu0 }
0x101a   :  { %v2291_v58 = vpop.f32.mrb[17].mxu0 }
0x101f   :  { %v1727_v55 = vpop.f32.mrb[12].mxu1 }
0x1020   :  { %v2269_v56 = vpop.f32.mrb[13].mxu1  ;;  %2279 = vmatmul.mubr.msk.f32.vlgmr.msra.gmra.mrb[14].mxu1 %vm203_vm0, %v1727_v55 }
0x1021   :  { %2743 = shalt.err (!%p2740_p6)
}
0x1022   :  { %s2744_s13 = scalar_lea.hbm %s3339_s15, 256 }
0x1023   :  { %p2745_p7 = scmp.ne.s32.totalorder %s3339_s15, %s2744_s13  ;;  %p2748_p8 = scmp.lt.u32.totalorder %s2744_s13, %s3339_s15 }
0x1025   :  { %p2750_p9 = pnand %p2748_p8, %p2745_p7 }
0x1027   :  { %2753 = shalt.err (!%p2750_p9)
}
0x1028   :  { %1907 = dma.vmem_to_hbm [thread:$0]  %s1902_s10, 256, %s3339_s15, [#allocation4], %s2791_s0, %s2791_s0, %s2792_s17  }
0x1029   :  { %v1986_v59 = vld [vmem:[%s3338_s14] ss:$0 sm:$0xff]  ;;  %s2810_s25 = smov [#allocation18]  }
0x102a   :  { %s1914_s7 = sshll.u32 %s2810_s25, 4  ;;  %s1915_s7 = int_to_ptr.vmem [resolvable:$true] %s1914_s7 }
0x102b   :  { %s2754_s28 = scalar_lea.vmem %s1915_s7, 128  ;;  %p2759_p11 = scmp.lt.s32.totalorder %s1915_s7, %s1915_s7 }
0x102c   :  { %p2755_p10 = scmp.ne.s32.totalorder %s1915_s7, %s2754_s28  ;;  %p2760_p12 = scmp.lt.s32.totalorder %s2754_s28, %s2754_s28 }
0x102e   :  { %p2761_p13 = por %p2760_p12, %p2759_p11 }
0x1030   :  { %p2762_p0 = pnand %p2761_p13, %p2755_p10 }
0x10f3   :  { %v1809_v22 = vpop.f32.mrb[14].mxu1 }
0x10f4   :  { %v1883_v39 = vadd.f32 %v1882_v57, %v1809_v22  ;;  %v2280_v40 = vpop.f32.mrb[15].mxu1 }
0x10f6   :  { %v1893_v60 = vadd.f32 %v1986_v59, %v1883_v39 }
0x10f8   :  { %v1894_v61 = vmax.f32 %v1893_v60, 0.0 }
0x10fa   :  { %1895 = vst.msk [vmem:[#allocation18] sm:$0xff] %vm203_vm0, %v1894_v61 }
0x10fb   :  { %2765 = shalt.err (!%p2762_p0)
}
0x10fc   :  { %s3346_s17 = sld [smem:[#allocation28_spill]] }
0x1102   :  { %s2766_s14 = scalar_lea.hbm %s3346_s17, 128 }
0x1103   :  { %p2767_p1 = scmp.ne.s32.totalorder %s3346_s17, %s2766_s14  ;;  %p2770_p2 = scmp.lt.u32.totalorder %s2766_s14, %s3346_s17 }
0x1105   :  { %p2772_p3 = pnand %p2770_p2, %p2767_p1 }
0x1107   :  { %2775 = shalt.err (!%p2772_p3)
}
0x1108   :  { %1917 = dma.vmem_to_hbm [thread:$0]  %s1915_s7, 128, %s3346_s17, [#allocation19]  }
0x1109   :  { %2786 = dma.done.wait [#allocation4], 256  }
0x110a   :  { %2787 = vsyncadd [#allocation4], 4294967040 }
0x110b   :  { %2788 = dma.done.wait [#allocation19], 128  }
0x110c   :  { %2789 = vsyncadd [#allocation19], 4294967168 }
0x110d   :  { %1924 = vsyncpa [#allocation3], 1 }
0x110e   :  { %1925 = vsyncpa [#allocation6], 1 }
0x110f   :  { %1926 = vsyncpa [#allocation9], 1 }
0x1110   :  { %1927 = vsyncpa [#allocation12], 1 }
0x1111   :  { %1928 = vsyncpa [#allocation15], 1 }
0x1112   :  { %1929 = vsyncpa [#allocation4], 1 }
0x1113   :  { %1930 = vsyncpa [#allocation19], 1 }

</bundles_post_ra>
